<compile_context>
chip_gen: v7x
topology: tpu7x:2x2x1
jax: 0.10.0
libtpu: 0.0.40
codegen_flags: <defaults>
</compile_context>

<pallas_src>
import math

import jax
import jax.numpy as jnp
import numpy as np
from jax.experimental import pallas as pl
from jax.experimental.pallas import tpu as pltpu

# ---------------- problem sizes (scaled-down DOLG) ----------------
B = 2            # batch
C3 = 64          # "1024" channels of layer3 output
C4 = 128         # "2048" channels of layer4 output
H3 = W3 = 8      # layer3 spatial
H4 = W4 = 4      # layer4 spatial
HW3 = H3 * W3
HW4 = H4 * W4
D = 2 * C3       # fused descriptor dim ("2048")
NUM_CLASS = 512  # small stand-in for ~81k classes
NTILE = 128      # lane-dense class tile
N_TILES = NUM_CLASS // NTILE

GEM_EPS = 1e-6
ARC_S = 30.0
ARC_M = 0.15
COS_M = math.cos(ARC_M)
SIN_M = math.sin(ARC_M)
TH = math.cos(math.pi - ARC_M)
MM = math.sin(math.pi - ARC_M) * ARC_M
NORM_EPS = 1e-12  # F.normalize default


# ---------------- fused DOLG head kernel (grid over class tiles) -------------
def dolg_kernel(p_ref, label_ref, x4_ref, x3_ref, wt_ref, bt_ref,
                wf_ref, bf_ref, wa_ref, gf_ref, logit_ref, gn_ref):
    # p_ref:     (1,)  f32 SMEM        label_ref: (B, 1) i32 VMEM
    # x4_ref:    (B, HW4, C4)          x3_ref:    (B, HW3, C3)
    # wt_ref:    (C4, C3)              bt_ref:    (1, C3)
    # wf_ref:    (D, D) pre-transposed bf_ref:    (1, D)
    # wa_ref:    (D, NTILE) raw (unnormalized) arcface weight tile
    # gf_ref:    (B, D)                logit_ref: (B, NTILE)
    # gn_ref:    (B, D) VMEM scratch, persists across class tiles
    tile = pl.program_id(0)

    # ---- descriptor: computed once, stashed in VMEM scratch ----------------
    @pl.when(tile == 0)
    def _():
        p = p_ref[0]

        # GeneralizedMeanPoolingP: clamp(eps)^p -> spatial mean -> ^(1/p)
        x4 = x4_ref[...]                                      # (B, HW4, C4)
        xp = jnp.power(jnp.maximum(x4, GEM_EPS), p)
        pooled = jnp.mean(xp, axis=1)                         # (B, C4)
        fg_o = jnp.power(pooled, 1.0 / p)                     # (B, C4)

        # fc_t : C4 -> C3
        fg = jnp.dot(fg_o, wt_ref[...],
                     preferred_element_type=jnp.float32) + bt_ref[...]  # (B, C3)

        # collapsed orthogonal fusion + local avg pool (pool-then-project):
        #   fo = mean(x3) - (mean(x3)·fg / ||fg||^2) * fg    (exact: linear)
        m3 = jnp.mean(x3_ref[...], axis=1)                    # (B, C3)
        norm2 = jnp.sum(fg * fg, axis=1, keepdims=True)       # (B, 1)
        inv_norm2 = pl.reciprocal(norm2)                      # matches torch (no eps)
        coef = jnp.sum(m3 * fg, axis=1, keepdims=True) * inv_norm2
        fo = m3 - coef * fg                                   # (B, C3)

        # fc over [fg, fo]: fold the concat into a split-weight matmul
        g = (jnp.dot(fg, wf_ref[pl.ds(0, C3), :],
                     preferred_element_type=jnp.float32)
             + jnp.dot(fo, wf_ref[pl.ds(C3, C3), :],
                       preferred_element_type=jnp.float32)
             + bf_ref[...])                                   # (B, D)
        gf_ref[...] = g

        # F.normalize(g) cached for the class-tile loop
        gnorm = jnp.sqrt(jnp.sum(g * g, axis=1, keepdims=True))
        gn_ref[...] = g * pl.reciprocal(jnp.maximum(gnorm, NORM_EPS))

    # ---- ArcMarginProduct, streamed per class tile --------------------------
    # Column normalization of the class weight is fused here: instead of
    # materializing W/||col|| (an extra HBM pass), scale the matmul result.
    w = wa_ref[...].astype(jnp.float32)                       # (D, NTILE)
    col_norm = jnp.sqrt(jnp.sum(w * w, axis=0, keepdims=True))
    inv_col = pl.reciprocal(jnp.maximum(col_norm, NORM_EPS))  # (1, NTILE)
    cosine = jnp.dot(gn_ref[...], w,
                     preferred_element_type=jnp.float32) * inv_col   # (B, NTILE)

    sine = jnp.sqrt(jnp.maximum(1.0 - cosine * cosine, 0.0))
    phi = cosine * COS_M - sine * SIN_M
    phi = jnp.where(cosine > TH, phi, cosine - MM)            # easy_margin=False

    lbl = label_ref[...]                                      # (B, 1) int32
    col = (jax.lax.broadcasted_iota(jnp.int32, (B, NTILE), 1)
           + tile * NTILE)
    one_hot = (col == lbl).astype(jnp.float32)
    logit_ref[...] = (one_hot * phi + (1.0 - one_hot) * cosine) * ARC_S


# ---------------- wrapper ----------------
@jax.jit
def dolg_forward(x3_nhwc, x4_nhwc, label, params):
    x3_flat = x3_nhwc.reshape(B, HW3, C3)
    x4_flat = x4_nhwc.reshape(B, HW4, C4)

    smem_spec = pl.BlockSpec(memory_space=pltpu.MemorySpace.SMEM)

    cost = pl.CostEstimate(
        flops=2 * B * (C4 * C3 + D * D + D * NUM_CLASS)
              + 8 * B * (HW4 * C4 + HW3 * C3),
        transcendentals=B * (HW4 * C4 + C4 + NUM_CLASS),
        bytes_accessed=4 * (B * HW3 * C3 + B * HW4 * C4 + C4 * C3 + D * D
                            + D * NUM_CLASS + B * D + B * NUM_CLASS),
    )

    gf, logit = pl.pallas_call(
        dolg_kernel,
        out_shape=(
            jax.ShapeDtypeStruct((B, D), jnp.float32),
            jax.ShapeDtypeStruct((B, NUM_CLASS), jnp.float32),
        ),
        grid_spec=pltpu.PrefetchScalarGridSpec(
            num_scalar_prefetch=0,
            grid=(N_TILES,),
            in_specs=[
                smem_spec,                                          # p     (1,)
                pl.BlockSpec((B, 1), lambda i: (0, 0)),             # label (B,1)
                pl.BlockSpec((B, HW4, C4), lambda i: (0, 0, 0)),    # x4
                pl.BlockSpec((B, HW3, C3), lambda i: (0, 0, 0)),    # x3
                pl.BlockSpec((C4, C3), lambda i: (0, 0)),           # wt_t
                pl.BlockSpec((1, C3), lambda i: (0, 0)),            # bt
                pl.BlockSpec((D, D), lambda i: (0, 0)),             # wf_t
                pl.BlockSpec((1, D), lambda i: (0, 0)),             # bf
                pl.BlockSpec((D, NTILE), lambda i: (0, i)),         # wa_t tile
            ],
            out_specs=[
                pl.BlockSpec((B, D), lambda i: (0, 0)),             # gf
                pl.BlockSpec((B, NTILE), lambda i: (0, i)),         # logit tile
            ],
            scratch_shapes=[pltpu.VMEM((B, D), jnp.float32)],       # gn cache
        ),
        compiler_params=pltpu.CompilerParams(
            # class-tile axis carries gn scratch set under pl.when(tile==0),
            # so it must stay sequential ("arbitrary"); see header note on v7x.
            dimension_semantics=("arbitrary",)),
        cost_estimate=cost,
    )(params["p"].reshape(1),
      label.astype(jnp.int32).reshape(B, 1),
      x4_flat, x3_flat, params["wt_t"], params["bt"],
      params["wf_t"], params["bf"], params["wa_t"])
    return gf, logit


# ---------------- pure-JAX reference (mirrors the PyTorch forward) -----------
def dolg_reference(x3_nhwc, x4_nhwc, label, params):
    p = params["p"][0]
    xp = jnp.power(jnp.maximum(x4_nhwc, GEM_EPS), p)
    pooled = jnp.mean(xp, axis=(1, 2))
    fg_o = jnp.power(pooled, 1.0 / p)
    fg = fg_o @ params["wt_t"] + params["bt"]
    fg_norm = jnp.sqrt(jnp.sum(fg * fg, axis=1))
    x3f = x3_nhwc.reshape(B, HW3, C3)
    s = jnp.einsum("bkc,bc->bk", x3f, fg)
    proj = jnp.einsum("bk,bc->bkc", s, fg) / (fg_norm * fg_norm)[:, None, None]
    fo = jnp.mean(x3f - proj, axis=1)
    ff = jnp.concatenate([fg, fo], axis=1)
    g = ff @ params["wf_t"] + params["bf"]
    gn = g / jnp.maximum(jnp.linalg.norm(g, axis=1, keepdims=True), NORM_EPS)
    wa_t = params["wa_t"]
    wn_t = wa_t / jnp.maximum(jnp.linalg.norm(wa_t, axis=0, keepdims=True), NORM_EPS)
    cosine = gn @ wn_t
    sine = jnp.sqrt(jnp.maximum(1.0 - cosine * cosine, 0.0))
    phi = cosine * COS_M - sine * SIN_M
    phi = jnp.where(cosine > TH, phi, cosine - MM)
    one_hot = jax.nn.one_hot(label, NUM_CLASS, dtype=cosine.dtype)
    logit = (one_hot * phi + (1.0 - one_hot) * cosine) * ARC_S
    return g, logit


if __name__ == "__main__":
    key = jax.random.PRNGKey(0)
    ks = jax.random.split(key, 8)

    # backbone stage outputs (post-ReLU-like, non-negative), NHWC
    x3 = jax.random.uniform(ks[0], (B, H3, W3, C3), dtype=jnp.float32)
    x4 = jax.random.uniform(ks[1], (B, H4, W4, C4), dtype=jnp.float32)
    label = jax.random.randint(ks[2], (B,), 0, NUM_CLASS, dtype=jnp.int32)

    # deterministic parameter init (shapes follow the module __init__)
    params = {
        "p": jnp.full((1,), 3.0, dtype=jnp.float32),                               # GeM norm
        "wt_t": 0.05 * jax.random.normal(ks[3], (C4, C3), dtype=jnp.float32),      # fc_t
        "bt": 0.01 * jax.random.normal(ks[4], (1, C3), dtype=jnp.float32),
        "wf_t": 0.05 * jax.random.normal(ks[5], (D, D), dtype=jnp.float32),        # fc
        "bf": 0.01 * jax.random.normal(ks[6], (1, D), dtype=jnp.float32),
        "wa_t": 0.05 * jax.random.normal(ks[7], (D, NUM_CLASS), dtype=jnp.float32),  # arcface
    }

    gf, logit = dolg_forward(x3, x4, label, params)
    gf, logit = jax.block_until_ready((gf, logit))

    gf_ref, logit_ref = dolg_reference(x3, x4, label, params)
    np.testing.assert_allclose(np.asarray(gf), np.asarray(gf_ref),
                               rtol=5e-3, atol=5e-3)
    np.testing.assert_allclose(np.asarray(logit), np.asarray(logit_ref),
                               rtol=5e-3, atol=5e-3)

    print("KERNEL_OK")
</pallas_src>

<mosaic_0001>
module attributes {stable_mosaic.version = 11 : i64} {
  func.func @dolg_kernel(%arg0: i32, %arg1: memref<1xf32, #tpu.memory_space<smem>>, %arg2: memref<2x1xi32, #tpu.memory_space<vmem>>, %arg3: memref<2x16x128xf32, #tpu.memory_space<vmem>>, %arg4: memref<2x64x64xf32, #tpu.memory_space<vmem>>, %arg5: memref<128x64xf32, #tpu.memory_space<vmem>>, %arg6: memref<1x64xf32, #tpu.memory_space<vmem>>, %arg7: memref<128x128xf32, #tpu.memory_space<vmem>>, %arg8: memref<1x128xf32, #tpu.memory_space<vmem>>, %arg9: memref<128x128xf32, #tpu.memory_space<vmem>>, %arg10: memref<2x128xf32, #tpu.memory_space<vmem>>, %arg11: memref<2x128xf32, #tpu.memory_space<vmem>>, %arg12: memref<2x128xf32, #tpu.memory_space<vmem>>) attributes {dimension_semantics = [#tpu.dimension_semantics<arbitrary>], iteration_bounds = array<i64: 4>, scalar_prefetch = 0 : i64, scratch_operands = 1 : i64, tpu.core_type = #tpu.core_type<tc>, window_params = [{transform_indices = @transform_0, window_bounds = array<i64: 1>}, {pipeline_mode = #tpu.pipeline_mode<synchronous>, transform_indices = @transform_1, window_bounds = array<i64: 2, 1>}, {pipeline_mode = #tpu.pipeline_mode<synchronous>, transform_indices = @transform_2, window_bounds = array<i64: 2, 16, 128>}, {pipeline_mode = #tpu.pipeline_mode<synchronous>, transform_indices = @transform_3, window_bounds = array<i64: 2, 64, 64>}, {pipeline_mode = #tpu.pipeline_mode<synchronous>, transform_indices = @transform_4, window_bounds = array<i64: 128, 64>}, {pipeline_mode = #tpu.pipeline_mode<synchronous>, transform_indices = @transform_5, window_bounds = array<i64: 1, 64>}, {pipeline_mode = #tpu.pipeline_mode<synchronous>, transform_indices = @transform_6, window_bounds = array<i64: 128, 128>}, {pipeline_mode = #tpu.pipeline_mode<synchronous>, transform_indices = @transform_7, window_bounds = array<i64: 1, 128>}, {transform_indices = @transform_8, window_bounds = array<i64: 128, 128>}, {pipeline_mode = #tpu.pipeline_mode<synchronous>, transform_indices = @transform_9, window_bounds = array<i64: 2, 128>}, {transform_indices = @transform_10, window_bounds = array<i64: 2, 128>}]} {
    %c0_i32 = arith.constant 0 : i32
    %0 = arith.cmpi eq, %arg0, %c0_i32 : i32
    %1 = arith.extui %0 : i1 to i32
    %c0_i32_0 = arith.constant 0 : i32
    %2 = arith.cmpi ne, %1, %c0_i32_0 : i32
    scf.if %2 {
      %c0_18 = arith.constant 0 : index
      %48 = memref.load %arg1[%c0_18] : memref<1xf32, #tpu.memory_space<smem>>
      %c0_19 = arith.constant 0 : index
      %c0_20 = arith.constant 0 : index
      %c0_21 = arith.constant 0 : index
      %49 = vector.load %arg3[%c0_19, %c0_20, %c0_21] : memref<2x16x128xf32, #tpu.memory_space<vmem>>, vector<2x16x128xf32>
      %cst_22 = arith.constant 9.99999997E-7 : f32
      %50 = vector.broadcast %cst_22 : f32 to vector<2x16x128xf32>
      %51 = arith.maximumf %49, %50 : vector<2x16x128xf32>
      %52 = vector.broadcast %48 : f32 to vector<2x16x128xf32>
      %53 = math.powf %51, %52 : vector<2x16x128xf32>
      %cst_23 = arith.constant dense<0.000000e+00> : vector<2x128xf32>
      %54 = vector.multi_reduction <add>, %53, %cst_23 [1] : vector<2x16x128xf32> to vector<2x128xf32>
      %cst_24 = arith.constant 1.600000e+01 : f32
      %55 = vector.broadcast %cst_24 : f32 to vector<2x128xf32>
      %56 = arith.divf %54, %55 : vector<2x128xf32>
      %cst_25 = arith.constant 1.000000e+00 : f32
      %57 = arith.divf %cst_25, %48 : f32
      %58 = vector.broadcast %57 : f32 to vector<2x128xf32>
      %59 = math.powf %56, %58 : vector<2x128xf32>
      %c0_26 = arith.constant 0 : index
      %c0_27 = arith.constant 0 : index
      %60 = vector.load %arg5[%c0_26, %c0_27] : memref<128x64xf32, #tpu.memory_space<vmem>>, vector<128x64xf32>
      %cst_28 = arith.constant dense<0.000000e+00> : vector<2x64xf32>
      %61 = tpu.matmul %59, %60, %cst_28 {dimension_numbers = #tpu.dot_dimension_numbers<[1], [0], [0], [1], [0, 0, 1, 1], [], []>} : vector<2x128xf32>, vector<128x64xf32>, vector<2x64xf32> -> vector<2x64xf32>
      %c0_29 = arith.constant 0 : index
      %c0_30 = arith.constant 0 : index
      %62 = vector.load %arg6[%c0_29, %c0_30] : memref<1x64xf32, #tpu.memory_space<vmem>>, vector<1x64xf32>
      %63 = vector.broadcast %62 : vector<1x64xf32> to vector<2x64xf32>
      %64 = arith.addf %61, %63 : vector<2x64xf32>
      %c0_31 = arith.constant 0 : index
      %c0_32 = arith.constant 0 : index
      %c0_33 = arith.constant 0 : index
      %65 = vector.load %arg4[%c0_31, %c0_32, %c0_33] : memref<2x64x64xf32, #tpu.memory_space<vmem>>, vector<2x64x64xf32>
      %cst_34 = arith.constant dense<0.000000e+00> : vector<2x64xf32>
      %66 = vector.multi_reduction <add>, %65, %cst_34 [1] : vector<2x64x64xf32> to vector<2x64xf32>
      %cst_35 = arith.constant 6.400000e+01 : f32
      %67 = vector.broadcast %cst_35 : f32 to vector<2x64xf32>
      %68 = arith.divf %66, %67 : vector<2x64xf32>
      %69 = arith.mulf %64, %64 : vector<2x64xf32>
      %cst_36 = arith.constant dense<0.000000e+00> : vector<2xf32>
      %70 = vector.multi_reduction <add>, %69, %cst_36 [1] : vector<2x64xf32> to vector<2xf32>
      %71 = vector.shape_cast %70 : vector<2xf32> to vector<2x1xf32>
      %72 = tpu.reciprocal %71 : vector<2x1xf32> -> vector<2x1xf32>
      %73 = arith.mulf %68, %64 : vector<2x64xf32>
      %cst_37 = arith.constant dense<0.000000e+00> : vector<2xf32>
      %74 = vector.multi_reduction <add>, %73, %cst_37 [1] : vector<2x64xf32> to vector<2xf32>
      %75 = vector.shape_cast %74 : vector<2xf32> to vector<2x1xf32>
      %76 = arith.mulf %75, %72 : vector<2x1xf32>
      %77 = vector.broadcast %76 : vector<2x1xf32> to vector<2x64xf32>
      %78 = arith.mulf %77, %64 : vector<2x64xf32>
      %79 = arith.subf %68, %78 : vector<2x64xf32>
      %c0_38 = arith.constant 0 : index
      %c0_39 = arith.constant 0 : index
      %80 = vector.load %arg7[%c0_38, %c0_39] : memref<128x128xf32, #tpu.memory_space<vmem>>, vector<64x128xf32>
      %cst_40 = arith.constant dense<0.000000e+00> : vector<2x128xf32>
      %81 = tpu.matmul %64, %80, %cst_40 {dimension_numbers = #tpu.dot_dimension_numbers<[1], [0], [0], [1], [0, 0, 1, 1], [], []>} : vector<2x64xf32>, vector<64x128xf32>, vector<2x128xf32> -> vector<2x128xf32>
      %c64 = arith.constant 64 : index
      %c0_41 = arith.constant 0 : index
      %82 = vector.load %arg7[%c64, %c0_41] : memref<128x128xf32, #tpu.memory_space<vmem>>, vector<64x128xf32>
      %cst_42 = arith.constant dense<0.000000e+00> : vector<2x128xf32>
      %83 = tpu.matmul %79, %82, %cst_42 {dimension_numbers = #tpu.dot_dimension_numbers<[1], [0], [0], [1], [0, 0, 1, 1], [], []>} : vector<2x64xf32>, vector<64x128xf32>, vector<2x128xf32> -> vector<2x128xf32>
      %84 = arith.addf %81, %83 : vector<2x128xf32>
      %c0_43 = arith.constant 0 : index
      %c0_44 = arith.constant 0 : index
      %85 = vector.load %arg8[%c0_43, %c0_44] : memref<1x128xf32, #tpu.memory_space<vmem>>, vector<1x128xf32>
      %86 = vector.broadcast %85 : vector<1x128xf32> to vector<2x128xf32>
      %87 = arith.addf %84, %86 : vector<2x128xf32>
      %c0_45 = arith.constant 0 : index
      %c0_46 = arith.constant 0 : index
      %88 = vector.load %arg10[%c0_45, %c0_46] : memref<2x128xf32, #tpu.memory_space<vmem>>, vector<2x128xf32>
      tpu.vector_store %arg10[%c0_45, %c0_46], %87 {strides = array<i32>} : memref<2x128xf32, #tpu.memory_space<vmem>>, vector<2x128xf32>,
      %89 = arith.mulf %87, %87 : vector<2x128xf32>
      %cst_47 = arith.constant dense<0.000000e+00> : vector<2xf32>
      %90 = vector.multi_reduction <add>, %89, %cst_47 [1] : vector<2x128xf32> to vector<2xf32>
      %91 = vector.shape_cast %90 : vector<2xf32> to vector<2x1xf32>
      %92 = math.sqrt %91 : vector<2x1xf32>
      %cst_48 = arith.constant 9.99999996E-13 : f32
      %93 = vector.broadcast %cst_48 : f32 to vector<2x1xf32>
      %94 = arith.maximumf %92, %93 : vector<2x1xf32>
      %95 = tpu.reciprocal %94 : vector<2x1xf32> -> vector<2x1xf32>
      %96 = vector.broadcast %95 : vector<2x1xf32> to vector<2x128xf32>
      %97 = arith.mulf %87, %96 : vector<2x128xf32>
      %c0_49 = arith.constant 0 : index
      %c0_50 = arith.constant 0 : index
      %98 = vector.load %arg12[%c0_49, %c0_50] : memref<2x128xf32, #tpu.memory_space<vmem>>, vector<2x128xf32>
      tpu.vector_store %arg12[%c0_49, %c0_50], %97 {strides = array<i32>} : memref<2x128xf32, #tpu.memory_space<vmem>>, vector<2x128xf32>,
    } else {
    }
    %c0 = arith.constant 0 : index
    %c0_1 = arith.constant 0 : index
    %3 = vector.load %arg9[%c0, %c0_1] : memref<128x128xf32, #tpu.memory_space<vmem>>, vector<128x128xf32>
    %4 = arith.mulf %3, %3 : vector<128x128xf32>
    %cst = arith.constant dense<0.000000e+00> : vector<128xf32>
    %5 = vector.multi_reduction <add>, %4, %cst [0] : vector<128x128xf32> to vector<128xf32>
    %6 = vector.shape_cast %5 : vector<128xf32> to vector<1x128xf32>
    %7 = math.sqrt %6 : vector<1x128xf32>
    %cst_2 = arith.constant 9.99999996E-13 : f32
    %8 = vector.broadcast %cst_2 : f32 to vector<1x128xf32>
    %9 = arith.maximumf %7, %8 : vector<1x128xf32>
    %10 = tpu.reciprocal %9 : vector<1x128xf32> -> vector<1x128xf32>
    %c0_3 = arith.constant 0 : index
    %c0_4 = arith.constant 0 : index
    %11 = vector.load %arg12[%c0_3, %c0_4] : memref<2x128xf32, #tpu.memory_space<vmem>>, vector<2x128xf32>
    %cst_5 = arith.constant dense<0.000000e+00> : vector<2x128xf32>
    %12 = tpu.matmul %11, %3, %cst_5 {dimension_numbers = #tpu.dot_dimension_numbers<[1], [0], [0], [1], [0, 0, 1, 1], [], []>} : vector<2x128xf32>, vector<128x128xf32>, vector<2x128xf32> -> vector<2x128xf32>
    %13 = vector.broadcast %10 : vector<1x128xf32> to vector<2x128xf32>
    %14 = arith.mulf %12, %13 : vector<2x128xf32>
    %15 = arith.mulf %14, %14 : vector<2x128xf32>
    %cst_6 = arith.constant 1.000000e+00 : f32
    %16 = vector.broadcast %cst_6 : f32 to vector<2x128xf32>
    %17 = arith.subf %16, %15 : vector<2x128xf32>
    %cst_7 = arith.constant 0.000000e+00 : f32
    %18 = vector.broadcast %cst_7 : f32 to vector<2x128xf32>
    %19 = arith.maximumf %17, %18 : vector<2x128xf32>
    %20 = math.sqrt %19 : vector<2x128xf32>
    %cst_8 = arith.constant 0.98877108 : f32
    %21 = vector.broadcast %cst_8 : f32 to vector<2x128xf32>
    %22 = arith.mulf %14, %21 : vector<2x128xf32>
    %cst_9 = arith.constant 0.149438128 : f32
    %23 = vector.broadcast %cst_9 : f32 to vector<2x128xf32>
    %24 = arith.mulf %20, %23 : vector<2x128xf32>
    %25 = arith.subf %22, %24 : vector<2x128xf32>
    %cst_10 = arith.constant -0.98877108 : f32
    %26 = vector.broadcast %cst_10 : f32 to vector<2x128xf32>
    %27 = arith.cmpf ogt, %14, %26 : vector<2x128xf32>
    %cst_11 = arith.constant 0.0224157199 : f32
    %28 = vector.broadcast %cst_11 : f32 to vector<2x128xf32>
    %29 = arith.subf %14, %28 : vector<2x128xf32>
    %30 = arith.select %27, %25, %29 : vector<2x128xi1>, vector<2x128xf32>
    %c0_12 = arith.constant 0 : index
    %c0_13 = arith.constant 0 : index
    %31 = vector.load %arg2[%c0_12, %c0_13] : memref<2x1xi32, #tpu.memory_space<vmem>>, vector<2x1xi32>
    %32 = tpu.iota {dimensions = array<i32: 1>} : vector<2x128xi32>
    %c128_i32 = arith.constant 128 : i32
    %33 = arith.muli %arg0, %c128_i32 : i32
    %34 = vector.broadcast %33 : i32 to vector<2x128xi32>
    %35 = arith.addi %32, %34 : vector<2x128xi32>
    %36 = vector.broadcast %31 : vector<2x1xi32> to vector<2x128xi32>
    %37 = arith.cmpi eq, %35, %36 : vector<2x128xi32>
    %38 = arith.extui %37 : vector<2x128xi1> to vector<2x128xi32>
    %39 = arith.sitofp %38 : vector<2x128xi32> to vector<2x128xf32>
    %40 = arith.mulf %39, %30 : vector<2x128xf32>
    %cst_14 = arith.constant 1.000000e+00 : f32
    %41 = vector.broadcast %cst_14 : f32 to vector<2x128xf32>
    %42 = arith.subf %41, %39 : vector<2x128xf32>
    %43 = arith.mulf %42, %14 : vector<2x128xf32>
    %44 = arith.addf %40, %43 : vector<2x128xf32>
    %cst_15 = arith.constant 3.000000e+01 : f32
    %45 = vector.broadcast %cst_15 : f32 to vector<2x128xf32>
    %46 = arith.mulf %44, %45 : vector<2x128xf32>
    %c0_16 = arith.constant 0 : index
    %c0_17 = arith.constant 0 : index
    %47 = vector.load %arg11[%c0_16, %c0_17] : memref<2x128xf32, #tpu.memory_space<vmem>>, vector<2x128xf32>
    tpu.vector_store %arg11[%c0_16, %c0_17], %46 {strides = array<i32>} : memref<2x128xf32, #tpu.memory_space<vmem>>, vector<2x128xf32>,
    return
  }
  func.func @transform_0(%arg0: i32) -> i32 {
    %c0_i32 = arith.constant 0 : i32
    %c0_i32_0 = arith.constant 0 : i32
    return %c0_i32 : i32
  }
  func.func @transform_1(%arg0: i32) -> (i32, i32) {
    %c0_i32 = arith.constant 0 : i32
    %c0_i32_0 = arith.constant 0 : i32
    %c0_i32_1 = arith.constant 0 : i32
    return %c0_i32, %c0_i32_0 : i32, i32
  }
  func.func @transform_2(%arg0: i32) -> (i32, i32, i32) {
    %c0_i32 = arith.constant 0 : i32
    %c0_i32_0 = arith.constant 0 : i32
    %c0_i32_1 = arith.constant 0 : i32
    %c0_i32_2 = arith.constant 0 : i32
    return %c0_i32, %c0_i32_0, %c0_i32_1 : i32, i32, i32
  }
  func.func @transform_3(%arg0: i32) -> (i32, i32, i32) {
    %c0_i32 = arith.constant 0 : i32
    %c0_i32_0 = arith.constant 0 : i32
    %c0_i32_1 = arith.constant 0 : i32
    %c0_i32_2 = arith.constant 0 : i32
    return %c0_i32, %c0_i32_0, %c0_i32_1 : i32, i32, i32
  }
  func.func @transform_4(%arg0: i32) -> (i32, i32) {
    %c0_i32 = arith.constant 0 : i32
    %c0_i32_0 = arith.constant 0 : i32
    %c0_i32_1 = arith.constant 0 : i32
    return %c0_i32, %c0_i32_0 : i32, i32
  }
  func.func @transform_5(%arg0: i32) -> (i32, i32) {
    %c0_i32 = arith.constant 0 : i32
    %c0_i32_0 = arith.constant 0 : i32
    %c0_i32_1 = arith.constant 0 : i32
    return %c0_i32, %c0_i32_0 : i32, i32
  }
  func.func @transform_6(%arg0: i32) -> (i32, i32) {
    %c0_i32 = arith.constant 0 : i32
    %c0_i32_0 = arith.constant 0 : i32
    %c0_i32_1 = arith.constant 0 : i32
    return %c0_i32, %c0_i32_0 : i32, i32
  }
  func.func @transform_7(%arg0: i32) -> (i32, i32) {
    %c0_i32 = arith.constant 0 : i32
    %c0_i32_0 = arith.constant 0 : i32
    %c0_i32_1 = arith.constant 0 : i32
    return %c0_i32, %c0_i32_0 : i32, i32
  }
  func.func @transform_8(%arg0: i32) -> (i32, i32) {
    %c0_i32 = arith.constant 0 : i32
    %c0_i32_0 = arith.constant 0 : i32
    return %c0_i32, %arg0 : i32, i32
  }
  func.func @transform_9(%arg0: i32) -> (i32, i32) {
    %c0_i32 = arith.constant 0 : i32
    %c0_i32_0 = arith.constant 0 : i32
    %c0_i32_1 = arith.constant 0 : i32
    return %c0_i32, %c0_i32_0 : i32, i32
  }
  func.func @transform_10(%arg0: i32) -> (i32, i32) {
    %c0_i32 = arith.constant 0 : i32
    %c0_i32_0 = arith.constant 0 : i32
    return %c0_i32, %arg0 : i32, i32
  }
}

</mosaic_0001>

<bundles_post_ra>
// kernel: dolg_forward.1
= control target key start
LH: loop header
LB: loop body
LE: loop exit
PB: predicated region body
PF: predicated region fallthrough
CT: control target
= control target key end

     0   :  { %s2994_s0 = inlined_call_operand.<no memory space> [shape: f32[1], index: 0, kind: input, shape index: {}]   ;;  %s2995_s1 = inlined_call_operand.vmem [shape: s32[2,1], index: 1, kind: input, shape index: {}]   ;;  %s2996_s2 = inlined_call_operand.vmem [shape: f32[2,16,128], index: 2, kind: input, shape index: {}]   ;;  %s2997_s3 = inlined_call_operand.vmem [shape: f32[2,64,64], index: 3, kind: input, shape index: {}]   ;;  %s2998_s4 = inlined_call_operand.vmem [shape: f32[128,64], index: 4, kind: input, shape index: {}]   ;;  %s2999_s5 = inlined_call_operand.vmem [shape: f32[1,64], index: 5, kind: input, shape index: {}]   ;;  %s3000_s6 = inlined_call_operand.hbm [shape: f32[128,128], index: 6, kind: input, shape index: {}]   ;;  %s3001_s7 = inlined_call_operand.vmem [shape: f32[1,128], index: 7, kind: input, shape index: {}]   ;;  %s3002_s8 = inlined_call_operand.hbm [shape: f32[128,512], index: 8, kind: input, shape index: {}]   ;;  %s3003_s9 = inlined_call_operand.hbm [shape: f32[2,128], index: 9, kind: output, shape index: {0}]   ;;  %s3004_s10 = inlined_call_operand.hbm [shape: f32[2,512], index: 10, kind: output, shape index: {1}]  }
   0x1   :  { %16 = sst [smem:[#allocation3]] %s2994_s0 }
   0x2   :  { %17 = vsyncpa [#allocation5], 0 }
   0x3   :  { %18 = vsyncpa [#allocation8], 0 }
   0x4   :  { %20 = vsyncpa [#allocation8 + $0x1], 0 }
   0x5   :  { %21 = vsyncpa [#allocation6], 0 }
   0x6   :  { %22 = vsyncpa [#allocation11], 0 }
   0x7   :  { %24 = vsyncpa [#allocation11 + $0x1], 0  ;;  %s2017_s15 = smov 0   ;;  %s2019_s16 = smov 0  }
   0x8   :  { %s2021_s17 = smov 0   ;;  %s2023_s18 = smov 0  }
   0x9 LB: > { %3027 = sst [smem:[#allocation16_spill]] %s1937_s17  ;;  %s2038_s0 = sadd.s32 4294967295, %s1941_s18   ;;  %s1941_s18 = sphi %s2023_s18, %s3158_s18   ;;  %s1937_s17 = sphi %s2021_s17, %s3160_s17   ;;  %s1933_s16 = sphi %s2019_s16, %s3162_s16   ;;  %s1929_s15 = sphi %s2017_s15, %s3161_s15  }
   0xa   : > { %s1098_s19 = sadd.s32 4294967294, %s1941_s18   ;;  %s2042_s20 = sadd.s32 1, %s1941_s18  }
   0xb   : > { %3028 = sst [smem:[#allocation17_spill]] %s2042_s20  ;;  %s205_s21 = sadd.s32 1, %s1937_s17 }
   0xc   : > { %s202_s22 = ssub.s32 %s1941_s18, %s2042_s20  ;;  %p212_p0 = scmp.ne.s32.totalorder %s1937_s17, %s1933_s16 }
   0xd   : > { %p203_p1 = scmp.eq.s32.totalorder %s202_s22, 0  ;;  %p213_p2 = scmp.eq.s32.totalorder %s1941_s18, 0 }
   0xe   : > { %p218_p3 = scmp.ne.s32.totalorder %s1933_s16, %s1929_s15  ;;  %p3008_p4 = scmp.eq.s32.totalorder %s2038_s0, 0 }
   0xf   : > { %s2054_s23 = scalar_select %p203_p1, %s1937_s17, %s205_s21  }
  0x10   : > { %p2056_p5 = por %p213_p2, %p212_p0  ;;  %p2062_p6 = por %p3008_p4, %p218_p3 }
  0x11   : > { %3029 = sst [smem:[#allocation18_spill]] %s2054_s23  ;;  %p3005_p7 = scmp.eq.s32.totalorder %s2038_s0, 3 }
  0x12   : > { %s3030_s24 = scalar_select %p2056_p5, 1, 0 }
  0x13   : > { %s3031_s25 = scalar_select %p2062_p6, 1, 0 }
  0x14   : > { %p269_p8 = scmp.eq.s32.totalorder %s1098_s19, 3  ;;  %p1099_p9 = scmp.ge.s32.totalorder %s1941_s18, 1 }
  0x15   : > { %p276_p10 = scmp.lt.s32.totalorder %s1941_s18, 5  ;;  %p2071_p11 = por %p3005_p7, %p212_p0 }
  0x16   : > { %p2075_p12 = por %p269_p8, %p218_p3  ;;  %s1943_s29 = smov [#allocation4]  }
  0x17   : > { %s3032_s26 = scalar_select %p2071_p11, 1, 0 }
  0x18   : > { %s3033_s27 = scalar_select %p2075_p12, 1, 0 }
  0x19   : > { %p2079_p13 = pnand %p1099_p9, %p276_p10  ;;  %s306_s30 = sshll.u32 %s1943_s29, 4  ;;  %s307_s30 = int_to_ptr.vmem [resolvable:$true] %s306_s30 }
  0x1a   : > { %s323_s12 = sand.u32 1, %s1937_s17   ;;  %s1783_s19 = scalar_lea.hbm %s3000_s6, 2048 }
  0x1b   : > { %s3034_s28 = scalar_select %p2079_p13, 1, 0 }
  0x1c   : > { %p1680_p2 = pneg %p2079_p13  ;;  %p1784_p8 = scmp.ne.s32.totalorder %s3000_s6, %s1783_s19 }
  0x1e   : > { %p2088_p0 = pnand %p1680_p2, %p3008_p4  ;;  %p1790_p2 = scmp.lt.u32.totalorder %s1783_s19, %s3000_s6 }
  0x20   : > { %p1785_p9 = pneg %p2088_p0 }
  0x22   : > { %p1786_p10 = pnand %p1785_p9, %p1784_p8 }
  0x24   : > { %p1787_p7 = pneg %p1786_p10 }
  0x26   : > { %p1792_p1 = pnand %p1790_p2, %p1787_p7 }
  0x28   : > { %1795 = shalt.err (!%p1792_p1)
}
  0x29   : > { %s1796_s20 = scalar_lea.vmem %s307_s30, 2048  ;;  %p1804_p11 = scmp.lt.s32.totalorder %s307_s30, %s307_s30 }
  0x2a   : > { %p1797_p4 = scmp.ne.s32.totalorder %s307_s30, %s1796_s20  ;;  %p1805_p6 = scmp.lt.s32.totalorder %s1796_s20, %s1796_s20 }
  0x2c   : > { %p1799_p3 = pnand %p1797_p4, %p1785_p9  ;;  %p1806_p13 = por %p1805_p6, %p1804_p11 }
  0x2e   : > { %p1800_p12 = pneg %p1799_p3 }
  0x30   : > { %p1807_p5 = pnand %p1806_p13, %p1800_p12 }
  0x32   : > { %1810 = shalt.err (!%p1807_p5)
}
  0x33   : > { %s3013_s13 = smov 128   ;;  %s3014_s14 = smov 8  }
  0x34   : > { %1683 = dma.hbm_to_vmem [thread:$0]  (!%p2088_p0), %s3000_s6, 2048, %s307_s30, [#allocation5], %s3013_s13, %s3013_s13, %s3014_s14  }
  0x35   : > { %p3036_p4 = scmp.ne.s32.totalorder %s3030_s24, 0  ;;  %p3037_p7 = scmp.lt.s32.totalorder %s1941_s18, 4 }
  0x36   : > { %s1102_s21 = sshll.u32 %s323_s12, 7  ;;  %s1103_s22 = sshll.u32 %s1941_s18, 7 }
  0x37   : > { %p2117_p1 = pnand %p3037_p7, %p3036_p4  ;;  %s2125_s11 = scalar_lea.hbm %s3002_s8, %s1103_s22 }
  0x38   : > { %s327_s30 = scalar_lea.vmem [#allocation7], %s1102_s21  ;;  %s2129_s23 = scalar_lea.sflag [#allocation8], %s323_s12 }
  0x39   : > { %s333_s24 = sshll.u32 %s327_s30, 4  ;;  %s1811_s19 = scalar_lea.hbm %s2125_s11, 2048  ;;  %s2127_s24 = int_to_ptr.vmem [resolvable:$true] %s333_s24 }
  0x3a   : > { %p1812_p5 = scmp.ne.s32.totalorder %s2125_s11, %s1811_s19  ;;  %p1813_p6 = pneg %p2117_p1 }
  0x3b   : > { %s1816_s29 = scalar_lea.hbm %s3002_s8, 8192  ;;  %p1817_p13 = scmp.lt.u32.totalorder %s2125_s11, %s3002_s8 }
  0x3c   : > { %p1814_p11 = pnand %p1813_p6, %p1812_p5  ;;  %p1818_p0 = scmp.lt.u32.totalorder %s1816_s29, %s1811_s19 }
  0x3d   : > { %p1820_p8 = scmp.lt.u32.totalorder %s1811_s19, %s2125_s11 }
  0x3e   : > { %p1815_p12 = pneg %p1814_p11  ;;  %p1819_p3 = por %p1818_p0, %p1817_p13 }
  0x40   : > { %p1821_p9 = por %p1820_p8, %p1819_p3 }
  0x42   : > { %p1822_p10 = pnand %p1821_p9, %p1815_p12 }
  0x44   : > { %1825 = shalt.err (!%p1822_p10)
}
  0x45   : > { %s1826_s12 = scalar_lea.vmem %s2127_s24, 2048  ;;  %s1946_s21 = smov [#allocation7]  }
  0x46   : > { %p1827_p2 = scmp.ne.s32.totalorder %s2127_s24, %s1826_s12  ;;  %s1831_s30 = sshll.u32 %s1946_s21, 4  ;;  %s1832_s30 = int_to_ptr.vmem [resolvable:$false] %s1831_s30 }
  0x47   : > { %s1833_s13 = scalar_lea.vmem %s1832_s30, 4096  ;;  %p1834_p5 = scmp.lt.s32.totalorder %s2127_s24, %s1832_s30 }
  0x48   : > { %p1829_p4 = pnand %p1827_p2, %p1813_p6  ;;  %p1835_p11 = scmp.lt.s32.totalorder %s1833_s13, %s1826_s12 }
  0x4a   : > { %p1830_p7 = pneg %p1829_p4  ;;  %p1836_p13 = por %p1835_p11, %p1834_p5 }
  0x4c   : > { %p1837_p0 = pnand %p1836_p13, %p1830_p7 }
  0x4e   : > { %1840 = shalt.err (!%p1837_p0)
}
  0x4f   : > { %s1947_s14 = smov 512   ;;  %s3039_s19 = smov 8  }
  0x50   : > { %s3040_s17 = smov 128   ;;  %p3041_p6 = scmp.ne.s32.totalorder %s3034_s28, 0 }
  0x51   : > { %1687 = dma.hbm_to_vmem [thread:$0]  (!%p2117_p1), %s2125_s11, 2048, %s2127_s24, %s2129_s23, %s1947_s14, %s3040_s17, %s3039_s19  }
  0x52   : > { %345 = sbr.rel (%p3041_p6) target bundleno = 1294 (0x50e), region = 56  ;;  %p3042_p12 = scmp.eq.s32.totalorder (!%p3041_p6), %s2038_s0, 0 }
  0x59   : > { %1912 = dma.done.wait (%p3042_p12), [#allocation5], 2048   ;;  %p3043_p3 = pmov %p3042_p12 }
  0x5a   : > { %s2166_s22 = sand.u32 1, %s1933_s16   ;;  %p3044_p1 = scmp.ne.s32.totalorder %s3031_s25, 0 }
  0x5b   : > { %1914 = vsyncadd (%p3043_p3), [#allocation5], 4294965248  ;;  %s1106_s20 = sshll.u32 %s2166_s22, 7  ;;  %s352_s29 = scalar_lea.sflag [#allocation8], %s2166_s22 }
  0x5c   : > { %s2170_s12 = scalar_lea.vmem [#allocation7], %s1106_s20 }
  0x5d   : > { %1916 = dma.done.wait (%p3044_p1), %s352_s29, 2048  }
  0x5e   : > { %1918 = vsyncadd (%p3044_p1), %s352_s29, 4294965248  ;;  %s1107_s28 = sshll.u32 %s2166_s22, 1  ;;  %p3045_p8 = scmp.ne.s32.totalorder %s2038_s0, 0 }
  0x5f   : > { %s2177_s11 = scalar_lea.vmem [#allocation10], %s1107_s28  ;;  %s396_s24 = sld [smem:[#allocation3]] (!%p3045_p8)  ;;  %v433_v0 = vld [vmem:[%s2998_s4] sm:$0xff] (!%p3045_p8)  ;;  %v434_v1 = vld [vmem:[%s2998_s4 + $0x8] sm:$0xff] (!%p3045_p8)  ;;  %v435_v2 = vld [vmem:[%s2998_s4 + $0x10] sm:$0xff] (!%p3045_p8)  ;;  %v1948_v3 = vmov (!%p3045_p8), 0.0|0.0  }
  0x60   : > { %395 = sbr.rel (%p3045_p8) target bundleno = 995 (0x3e3), region = 68  ;;  %1282 = vmatprep.subr.bf16.mxu0 (!%p3045_p8), %v1948_v3  ;;  %v1283_v4 = vpack.c.bf16 (!%p3045_p8), %v434_v1, %v433_v0  ;;  %v436_v5 = vld [vmem:[%s2998_s4 + $0x18] sm:$0xff] (!%p3045_p8)  ;;  %1306 = vmatprep.subr.bf16.mxu1 (!%p3045_p8), %v1948_v3  ;;  %vm3015_vm0 = vmmov (!%p3045_p8), 0   ;;  %v1950_v6 = vmov (!%p3045_p8), 0.0   ;;  %v437_v8 = vld [vmem:[%s2998_s4 + $0x20] sm:$0xff] (!%p3045_p8)  ;;  %v438_v9 = vld [vmem:[%s2998_s4 + $0x28] sm:$0xff] (!%p3045_p8) }
  0x61   : > { %1206 = vmatprep.mubr.msk.f32.mxu0 (!%p3045_p8), %vm3015_vm0, %v1950_v6  ;;  %1225 = vmatprep.mubr.msk.f32.mxu1 (!%p3045_p8), %vm3015_vm0, %v1950_v6  ;;  %v1286_v7 = vpack.c.bf16 (!%p3045_p8), %v436_v5, %v435_v2  ;;  %v397_v10 = vld [vmem:[%s2996_s2] sm:$0xff] (!%p3045_p8)  ;;  %v1289_v13 = vpack.c.bf16 (!%p3045_p8), %v438_v9, %v437_v8  ;;  %v398_v14 = vld [vmem:[%s2996_s2 + $0x8] sm:$0xff] (!%p3045_p8)  ;;  %v439_v16 = vld [vmem:[%s2998_s4 + $0x30] sm:$0xff] (!%p3045_p8)  ;;  %v1951_v52 = vmov (!%p3045_p8), 2139095040   ;;  %v3058_v60 = vmov (!%p3045_p8), 0 }
  0x62   : > { %1284 = vmatpush3.bf16.msra.mxu0 (!%p3045_p8), %v1283_v4  ;;  %v2211_v12 = vmax.f32 (!%p3045_p8), %v397_v10, 1e-06  ;;  %v440_v17 = vld [vmem:[%s2998_s4 + $0x38] sm:$0xff] (!%p3045_p8)  ;;  %v399_v19 = vld [vmem:[%s2996_s2 + $0x10] sm:$0xff] (!%p3045_p8)  ;;  %v2235_v22 = vmax.f32 (!%p3045_p8), %v398_v14, 1e-06 }
  0x63   : > { %1285 = vmatprep.subr.bf16.mxu0 (!%p3045_p8), %v1948_v3  ;;  %v1292_v23 = vpack.c.bf16 (!%p3045_p8), %v440_v17, %v439_v16  ;;  %v441_v25 = vld [vmem:[%s2998_s4 + $0x40] sm:$0xff] (!%p3045_p8)  ;;  %v442_v26 = vld [vmem:[%s2998_s4 + $0x48] sm:$0xff] (!%p3045_p8)  ;;  %v2245_v27 = vmax.f32 (!%p3045_p8), %v399_v19, 1e-06  ;;  %v400_v28 = vld [vmem:[%s2996_s2 + $0x18] sm:$0xff] (!%p3045_p8)  ;;  %v3060_v61 = vmov (!%p3045_p8), 0 }
  0x64   : > { %v2228_v18 = vand.u32 (!%p3045_p8), 2147483647, %v2211_v12  ;;  %v2253_v29 = vand.u32 (!%p3045_p8), 2147483647, %v2235_v22  ;;  %v1295_v30 = vpack.c.bf16 (!%p3045_p8), %v442_v26, %v441_v25  ;;  %v443_v32 = vld [vmem:[%s2998_s4 + $0x50] sm:$0xff] (!%p3045_p8)  ;;  %v444_v33 = vld [vmem:[%s2998_s4 + $0x58] sm:$0xff] (!%p3045_p8) }
  0x65   : > { %v2209_v11 = vstv (!%p3045_p8), %s396_s24  ;;  %v2262_v34 = vmax.f32 (!%p3045_p8), %v400_v28, 1e-06  ;;  %v2272_v36 = vand.u32 (!%p3045_p8), 2147483647, %v2245_v27  ;;  %v1298_v38 = vpack.c.bf16 (!%p3045_p8), %v444_v33, %v443_v32  ;;  %v445_v40 = vld [vmem:[%s2998_s4 + $0x60] sm:$0xff] (!%p3045_p8)  ;;  %v446_v41 = vld [vmem:[%s2998_s4 + $0x68] sm:$0xff] (!%p3045_p8) }
  0x66   : > { %1744 = vrcp.f32 (!%p3045_p8), %v2209_v11  ;;  %1287 = vmatpush3.bf16.msra.mxu0 (!%p3045_p8), %v1286_v7  ;;  %v2218_v15 = vand.u32 (!%p3045_p8), 2147483647, %v2209_v11  ;;  %v1363_v20 = vtrunc.f32 (!%p3045_p8), %v2209_v11  ;;  %vm3022_vm6 = vcmp.lt.f32.partialorder (!%p3045_p8), %v2209_v11, 0  ;;  %v447_v45 = vld [vmem:[%s2998_s4 + $0x70] sm:$0xff] (!%p3045_p8)  ;;  %v448_v46 = vld [vmem:[%s2998_s4 + $0x78] sm:$0xff] (!%p3045_p8) }
  0x67   : > { %1288 = vmatprep.subr.bf16.mxu0 %v1948_v3  ;;  %1746 = vlog2.f32 %v2228_v18  ;;  %v2285_v42 = vand.u32 2147483647, %v2262_v34  ;;  %vm3018_vm7 = vcmp.eq.f32.partialorder %v2211_v12, 0  ;;  %v1301_v44 = vpack.c.bf16 %v446_v41, %v445_v40 }
  0x68   : > { %v1367_v21 = vtrunc.f32 %v2218_v15  ;;  %vm3016_vm1 = vcmp.eq.f32.partialorder %v2218_v15, 2139095040  ;;  %vm1364_vm2 = vcmp.ne.f32.partialorder %v2209_v11, %v1363_v20  ;;  %1748 = vlog2.f32 %v2253_v29  ;;  %vm2305_vm12 = vmand %vm3022_vm6, %vm3018_vm7 }
  0x69   : > { %vm2266_vm3 = vmor %vm1364_vm2, %vm3016_vm1  ;;  %1750 = vlog2.f32 %v2272_v36  ;;  %vm1366_vm8 = vcmp.lt.f32.partialorder %v2218_v15, 1266679808  ;;  %vm1378_vm10 = vcmp.gt.f32.partialorder %v2228_v18, 1065353216  ;;  %vm3017_vm11 = vcmp.lt.f32.partialorder %v2211_v12, 0 }
  0x6a   : > { %1290 = vmatpush3.bf16.msra.mxu0 %v1289_v13  ;;  %v1368_v24 = vcvt.f32.s32 %v1367_v21  ;;  %vm1371_vm5 = vmneg %vm2266_vm3  ;;  %1752 = vlog2.f32 %v2285_v42  ;;  %vm1377_vm14 = vcmp.lt.s32.totalorder %v2211_v12, 0  ;;  %v1304_v50 = vpack.c.bf16 %v448_v46, %v447_v45 }
  0x6b   : > { %1291 = vmatprep.subr.bf16.mxu0 %v1948_v3  ;;  %vm2316_vm15 = vmxor %vm3022_vm6, %vm1378_vm10  ;;  %v2323_v53 = vsel %vm3022_vm6, 0, %v1951_v52  ;;  %vm3021_vm10 = vcmp.eq.f32.partialorder %v2235_v22, 0  ;;  %v1952_v0 = vmov 0   ;;  %vm3067_vm7 = vcmp.eq.f32.partialorder %v2209_v11, 0 }
  0x6c   : > { %v1369_v31 = vand.u32 1, %v1368_v24  ;;  %vm2329_vm2 = vmand %vm3017_vm11, %vm2266_vm3  ;;  %vm1430_vm11 = vcmp.gt.f32.partialorder %v2253_v29, 1065353216  ;;  %v1395_v59 = vxor.u32 2147483648, %v2323_v53  ;;  %v2388_v1 = vsel %vm3022_vm6, 2139095040, %v1952_v0 }
  0x6d   : > { %vm3068_vm0 = vcmp.eq.f32.partialorder %v2211_v12, 1065353216  ;;  %v3069_v7 = vmov 0  ;;  %v3072_v8 = vmov 0 }
  0x6e   : > { %1293 = vmatpush3.bf16.msra.mxu0 %v1292_v23  ;;  %vm1370_vm4 = vcmp.eq.s32.totalorder %v1369_v31, 1 }
  0x6f   : > { %1294 = vmatprep.subr.bf16.mxu0 %v1948_v3  ;;  %vm1372_vm9 = vmand %vm1370_vm4, %vm1371_vm5  ;;  %vm1399_vm4 = vcmp.ne.f32.partialorder %v2211_v12, %v2211_v12  ;;  %vm3019_vm5 = vcmp.ne.f32.partialorder %v2209_v11, %v2209_v11 }
  0x70   : > { %v1745_v37 = vpop.eup %1744  ;;  %vm2309_vm13 = vmand %vm1366_vm8, %vm1372_vm9  ;;  %vm3020_vm8 = vcmp.lt.f32.partialorder %v2235_v22, 0 }
  0x71   : > { %1562 = vpush %v1745_v37  ;;  %v1747_v39 = vpop.eup %1746  ;;  %vm2342_vm9 = vmand %vm1377_vm14, %vm2309_vm13  ;;  %v2436_v14 = vsel %vm2309_vm13, %v1395_v59, %v2323_v53 }
  0x72   : > { %1296 = vmatpush3.bf16.msra.mxu0 %v1295_v30  ;;  %v1356_v43 = vmul.f32 %v1747_v39, %v2209_v11  ;;  %v1749_v49 = vpop.eup %1748  ;;  %vm2362_vm14 = vmor %vm1399_vm4, %vm3019_vm5  ;;  %vm1391_vm5 = vcmp.eq.f32.partialorder %v2211_v12, 3212836864 }
  0x73   : > { %1297 = vmatprep.subr.bf16.mxu0 %v1948_v3  ;;  %v1408_v55 = vmul.f32 %v1749_v49, %v2209_v11  ;;  %v1751_v56 = vpop.eup %1750  ;;  %v3059_v60 = vsel %vm2362_vm14, 4294967295, %v3058_v60  ;;  %vm2371_vm1 = vmand %vm3020_vm8, %vm2266_vm3 }
  0x74   : > { %1754 = vpow2.f32 %v1356_v43  ;;  %v1460_v58 = vmul.f32 %v1751_v56, %v2209_v11  ;;  %v3061_v61 = vsel %vm2371_vm1, 4294967295, %v3060_v61  ;;  %vm2380_vm4 = vmand %vm3022_vm6, %vm3021_vm10  ;;  %v1753_v63 = vpop.eup %1752 }
  0x75   : > { %1756 = vpow2.f32 %v1408_v55  ;;  %vm2394_vm8 = vmxor %vm3022_vm6, %vm1430_vm11  ;;  %vm3071_vm11 = vcmp.lt.s32.totalorder %v2235_v22, 0  ;;  %v1512_v10 = vmul.f32 %v1753_v63, %v2209_v11  ;;  %v536_v55 = vld [vmem:[%s2997_s3 + $0x28] sm:$0xff] }
  0x76   : > { %1299 = vmatpush3.bf16.msra.mxu0 %v1298_v38  ;;  %1758 = vpow2.f32 %v1460_v58  ;;  %vm3066_vm10 = vmor %vm2305_vm12, %vm2316_vm15  ;;  %vm3023_vm12 = vcmp.lt.f32.partialorder %v2245_v27, 0  ;;  %vm3074_vm15 = vcmp.eq.f32.partialorder %v2245_v27, 0 }
  0x77   : > { %1300 = vmatprep.subr.bf16.mxu0 %v1948_v3  ;;  %v1390_v5 = vsel %vm3066_vm10, 2139095040, %v1952_v0  ;;  %vm2409_vm14 = vmor %vm3068_vm0, %vm3067_vm7  ;;  %vm3075_vm10 = vcmp.lt.f32.partialorder %v2209_v11, 0  ;;  %vm3078_vm0 = vcmp.gt.f32.partialorder %v2272_v36, 1065353216  ;;  %1760 = vpow2.f32 %v1512_v10 }
  0x78   : > { %v3070_v7 = vsel %vm2409_vm14, 4294967295, %v3069_v7  ;;  %vm2417_vm6 = vmand %vm3071_vm11, %vm2309_vm13  ;;  %v1392_v20 = vsel %vm1391_vm5, 1065353216, %v1390_v5  ;;  %vm1451_vm5 = vcmp.ne.f32.partialorder %v2235_v22, %v2235_v22 }
  0x79   : > { %v3073_v8 = vsel %vm2417_vm6, 4294967295, %v3072_v8  ;;  %vm2426_vm1 = vmand %vm3075_vm10, %vm3074_vm15  ;;  %vm3082_vm15 = vcmp.eq.f32.partialorder %v2211_v12, 0  ;;  %vm1480_vm6 = vcmp.eq.f32.partialorder %v2245_v27, 1065353216 }
  0x7a   : > { %1302 = vmatpush3.bf16.msra.mxu0 %v1301_v44  ;;  %vm3079_vm7 = vmmov %vm3075_vm10  ;;  %vm3024_vm10 = vcmp.eq.f32.partialorder %v2262_v34, 0 }
  0x7b   : > { %1303 = vmatprep.subr.bf16.mxu0 %v1948_v3  ;;  %vm2442_vm11 = vmxor %vm3079_vm7, %vm3078_vm0 }
  0x7c   : > { %vm2458_vm0 = vmand %vm3023_vm12, %vm2266_vm3  ;;  %vm3089_vm12 = vcmp.eq.f32.partialorder %v2218_v15, 2139095040 }
  0x7e   : > { %1305 = vmatpush3.bf16.msra.mxu0 %v1304_v50  ;;  %v1755_v4 = vpop.eup %1754  ;;  %v544_v50 = vld [vmem:[%s2997_s3 + $0x68] sm:$0xff] }
  0x7f   : > { %v1381_v13 = vsel %vm2329_vm2, 2143289344, %v1755_v4  ;;  %vm3085_vm2 = vcmp.lt.f32.partialorder %v2211_v12, 0  ;;  %v1757_v26 = vpop.eup %1756 }
  0x80   : > { %v1383_v17 = vsel %vm3082_vm15, %v2388_v1, %v1381_v13  ;;  %v1397_v23 = vsel %vm3085_vm2, %v2436_v14, %v2323_v53  ;;  %vm3086_vm2 = vmmov %vm3079_vm7  ;;  %v1759_v38 = vpop.eup %1758 }
  0x81   : > { %v1385_v19 = vxor.u32 2147483648, %v1383_v17  ;;  %vm2484_vm14 = vmand %vm3086_vm2, %vm3024_vm10  ;;  %vm3091_vm2 = vcmp.gt.f32.partialorder %v2285_v42, 1065353216  ;;  %v1485_v45 = vsel %vm2458_vm0, 2143289344, %v1759_v38  ;;  %vm3109_vm0 = vcmp.lt.f32.partialorder %v2245_v27, 0  ;;  %v1761_v57 = vpop.eup %1760 }
  0x82   : > { %vm3090_vm15 = vmor %vm2380_vm4, %vm2394_vm8  ;;  %vm3097_vm8 = vcmp.ne.f32.partialorder %v2209_v11, %v2209_v11  ;;  %v1501_v49 = vsel %vm3109_vm0, %v2436_v14, %v2323_v53 }
  0x83   : > { %v1386_v24 = vsel %vm2342_vm9, %v1385_v19, %v1383_v17  ;;  %v1442_v30 = vsel %vm3090_vm15, 2139095040, %v1952_v0  ;;  %vm3092_vm10 = vmmov %vm3079_vm7  ;;  %vm3096_vm9 = vnez %v3061_v61  ;;  %vm3025_vm15 = vcmp.lt.f32.partialorder %v2262_v34, 0 }
  0x84   : > { %v1393_v28 = vsel %vm3089_vm12, %v1392_v20, %v1386_v24  ;;  %vm2502_vm7 = vmxor %vm3092_vm10, %vm3091_vm2  ;;  %vm3095_vm12 = vcmp.eq.f32.partialorder %v2228_v18, 2139095040  ;;  %v1433_v33 = vsel %vm3096_vm9, 2143289344, %v1757_v26  ;;  %vm3100_vm2 = vnez %v3059_v60 }
  0x85   : > { %v1398_v32 = vsel %vm3095_vm12, %v1397_v23, %v1393_v28  ;;  %vm2516_vm4 = vmor %vm1451_vm5, %vm3097_vm8  ;;  %vm3101_vm9 = vcmp.eq.f32.partialorder %v2235_v22, 0  ;;  %vm3102_vm12 = vcmp.lt.s32.totalorder %v2245_v27, 0 }
  0x86   : > { %v1402_v18 = vsel %vm3100_vm2, 2143289344, %v1398_v32  ;;  %v1435_v39 = vsel %vm3101_vm9, %v2388_v1, %v1433_v33  ;;  %vm2531_vm5 = vmand %vm3102_vm12, %vm2309_vm13  ;;  %vm1495_vm2 = vcmp.eq.f32.partialorder %v2245_v27, 3212836864  ;;  %vm3106_vm9 = vcmp.eq.f32.partialorder %v2235_v22, 3212836864 }
  0x87   : > { %vm3105_vm8 = vmor %vm2426_vm1, %vm2442_vm11  ;;  %v1437_v43 = vxor.u32 2147483648, %v1435_v39  ;;  %v1444_v44 = vsel %vm3106_vm9, 1065353216, %v1442_v30  ;;  %vm1503_vm12 = vcmp.ne.f32.partialorder %v2245_v27, %v2245_v27  ;;  %vm3107_vm1 = vcmp.lt.f32.partialorder %v2235_v22, 0 }
  0x88   : > { %v1494_v41 = vsel %vm3105_vm8, 2139095040, %v1952_v0  ;;  %vm1545_vm10 = vmor %vm2484_vm14, %vm2502_vm7  ;;  %v1449_v46 = vsel %vm3107_vm1, %v2436_v14, %v2323_v53  ;;  %vm3108_vm11 = vcmp.eq.f32.partialorder %v2245_v27, 0  ;;  %vm1533_vm8 = vcmp.lt.s32.totalorder %v2262_v34, 0 }
  0x89   : > { %v1487_v47 = vsel %vm3108_vm11, %v2388_v1, %v1485_v45  ;;  %vm2568_vm14 = vmand %vm3025_vm15, %vm2266_vm3  ;;  %vm3112_vm7 = vnez %v3070_v7  ;;  %vm3113_vm9 = vnez %v3073_v8  ;;  %vm3114_vm1 = vcmp.eq.f32.partialorder %v2209_v11, 0 }
  0x8a   : > { %v1404_v51 = vsel %vm3112_vm7, 1065353216, %v1402_v18  ;;  %v1438_v54 = vsel %vm3113_vm9, %v1437_v43, %v1435_v39  ;;  %vm3115_vm11 = vcmp.eq.f32.partialorder %v2235_v22, 1065353216  ;;  %v1489_v35 = vxor.u32 2147483648, %v1487_v47 }
  0x8b   : > { %vm2580_vm0 = vmor %vm3115_vm11, %vm3114_vm1  ;;  %v1496_v56 = vsel %vm1495_vm2, 1065353216, %v1494_v41  ;;  %vm3118_vm3 = vcmp.eq.f32.partialorder %v2218_v15, 2139095040  ;;  %vm3119_vm7 = vcmp.ne.f32.partialorder %v2209_v11, %v2209_v11  ;;  %vm1532_vm9 = vcmp.eq.f32.partialorder %v2262_v34, 1065353216 }
  0x8c   : > { %v1445_v58 = vsel %vm3118_vm3, %v1444_v44, %v1438_v54  ;;  %vm2589_vm15 = vmor %vm1503_vm12, %vm3119_vm7  ;;  %v1546_v60 = vsel %vm1545_vm10, 2139095040, %v1952_v0  ;;  %vm1547_vm1 = vcmp.eq.f32.partialorder %v2262_v34, 3212836864  ;;  %vm3122_vm11 = vcmp.eq.f32.partialorder %v2253_v29, 2139095040 }
  0x8d   : > { %v1450_v61 = vsel %vm3122_vm11, %v1449_v46, %v1445_v58  ;;  %v1490_v62 = vsel %vm2531_vm5, %v1489_v35, %v1487_v47  ;;  %vm3123_vm2 = vcmp.eq.f32.partialorder %v2209_v11, 0  ;;  %v1537_v2 = vsel %vm2568_vm14, 2143289344, %v1761_v57  ;;  %vm1540_vm14 = vmand %vm1533_vm8, %vm2309_vm13  ;;  %v545_v57 = vld [vmem:[%s2997_s3 + $0x70] sm:$0xff] }
  0x8e   : > { %vm2604_vm12 = vmor %vm1480_vm6, %vm3123_vm2  ;;  %vm1555_vm10 = vcmp.ne.f32.partialorder %v2262_v34, %v2262_v34  ;;  %vm3126_vm3 = vcmp.eq.f32.partialorder %v2209_v11, 1065353216  ;;  %v1454_v4 = vsel %vm2516_vm4, 2143289344, %v1450_v61  ;;  %vm3127_vm5 = vcmp.eq.f32.partialorder %v2218_v15, 2139095040 }
  0x8f   : > { %v1405_v29 = vsel %vm3126_vm3, %v2211_v12, %v1404_v51  ;;  %v1497_v5 = vsel %vm3127_vm5, %v1496_v56, %v1490_v62  ;;  %vm3128_vm6 = vcmp.eq.f32.partialorder %v2262_v34, 0  ;;  %v1456_v8 = vsel %vm2580_vm0, 1065353216, %v1454_v4  ;;  %vm3130_vm4 = vmmov %vm3126_vm3 }
  0x90   : > { %v1539_v7 = vsel %vm3128_vm6, %v2388_v1, %v1537_v2  ;;  %vm3129_vm7 = vcmp.eq.f32.partialorder %v2272_v36, 2139095040  ;;  %v1548_v10 = vsel %vm1547_vm1, 1065353216, %v1546_v60  ;;  %v1457_v13 = vsel %vm3130_vm4, %v2235_v22, %v1456_v8  ;;  %vm3134_vm1 = vmmov %vm3123_vm2 }
  0x91   : > { %v1502_v12 = vsel %vm3129_vm7, %v1501_v49, %v1497_v5  ;;  %v1541_v9 = vxor.u32 2147483648, %v1539_v7  ;;  %vm1535_vm11 = vcmp.eq.f32.partialorder %v2285_v42, 2139095040  ;;  %vm3131_vm13 = vcmp.lt.f32.partialorder %v2262_v34, 0  ;;  %vm1559_vm2 = vmor %vm1532_vm9, %vm3134_vm1 }
  0x92   : > { %v1506_v1 = vsel %vm2589_vm15, 2143289344, %v1502_v12  ;;  %v1553_v48 = vsel %vm3131_vm13, %v2436_v14, %v2323_v53  ;;  %vm3132_vm8 = vcmp.ne.f32.partialorder %v2209_v11, %v2209_v11  ;;  %v410_v22 = vadd.f32 %v1457_v13, %v1405_v29  ;;  %vm3133_vm15 = vmmov %vm3127_vm5 }
  0x93   : > { %v1508_v36 = vsel %vm2604_vm12, 1065353216, %v1506_v1  ;;  %v1542_v16 = vsel %vm1540_vm14, %v1541_v9, %v1539_v7  ;;  %vm1557_vm0 = vmor %vm1555_vm10, %vm3132_vm8 }
  0x94   : > { %v1549_v42 = vsel %vm3133_vm15, %v1548_v10, %v1542_v16  ;;  %v411_v14 = vrot.slane %v410_v22, 4  ;;  %vm3135_vm12 = vmmov %vm3126_vm3 }
  0x95   : > { %v1554_v53 = vsel %vm1535_vm11, %v1553_v48, %v1549_v42  ;;  %v1509_v17 = vsel %vm3135_vm12, %v2245_v27, %v1508_v36  ;;  %vm3136_vm10 = vmmov %vm3126_vm3 }
  0x96   : > { %v1558_v19 = vsel %vm1557_vm0, 2143289344, %v1554_v53  ;;  %v412_v21 = vadd.f32 %v411_v14, %v410_v22 }
  0x97   : > { %v1560_v20 = vsel %vm1559_vm2, 1065353216, %v1558_v19 }
  0x98   : > { %v1561_v23 = vsel %vm3136_vm10, %v2262_v34, %v1560_v20  ;;  %v413_v15 = vrot.slane %v412_v21, 2 }
  0x99   : > { %v417_v24 = vadd.f32 %v1561_v23, %v1509_v17 }
  0x9a   : > { %v414_v25 = vadd.f32 %v413_v15, %v412_v21  ;;  %v539_v15 = vld [vmem:[%s2997_s3 + $0x40] sm:$0xff] }
  0x9b   : > { %v418_v26 = vrot.slane %v417_v24, 4 }
  0x9c   : > { %v415_v28 = vrot.slane %v414_v25, 1 }
  0x9d   : > { %v419_v30 = vadd.f32 %v418_v26, %v417_v24  ;;  %v540_v24 = vld [vmem:[%s2997_s3 + $0x48] sm:$0xff] }
  0x9e   : > { %v416_v31 = vadd.f32 %v415_v28, %v414_v25  ;;  %v531_v25 = vld [vmem:[%s2997_s3] sm:$0xff]  ;;  %v532_v26 = vld [vmem:[%s2997_s3 + $0x8] sm:$0xff] }
  0x9f   : > { %v420_v32 = vrot.slane %v419_v30, 2 }
  0xa0   : > { %v2660_v37 = vmul.f32 0.0625, %v416_v31  ;;  %v541_v31 = vld [vmem:[%s2997_s3 + $0x50] sm:$0xff] }
  0xa1   : > { %v421_v33 = vadd.f32 %v420_v32, %v419_v30 }
  0xa2   : > { %v2663_v27 = vand.u32 2147483647, %v2660_v37  ;;  %s1563_s19 = spop %1562  ;;  %vm1585_vm6 = vcmp.eq.f32.partialorder %v2660_v37, 0  ;;  %vm1584_vm0 = vcmp.lt.f32.partialorder %v2660_v37, 0 }
  0xa3   : > { %v422_v38 = vrot.slane %v421_v33, 1  ;;  %v2665_v18 = vstv %s1563_s19 }
  0xa4   : > { %1762 = vlog2.f32 %v2663_v27  ;;  %v2669_v34 = vand.u32 2147483647, %v2665_v18  ;;  %v1573_v43 = vtrunc.f32 %v2665_v18  ;;  %vm1572_vm5 = vcmp.lt.f32.partialorder %v2665_v18, 0 }
  0xa5   : > { %v423_v11 = vadd.f32 %v422_v38, %v421_v33  ;;  %vm1588_vm14 = vcmp.gt.f32.partialorder %v2663_v27, 1065353216  ;;  %vm2695_vm11 = vmand %vm1572_vm5, %vm1585_vm6  ;;  %v1604_v35 = vsel %vm1572_vm5, 0, %v1951_v52  ;;  %v1592_v52 = vsel %vm1572_vm5, 2139095040, %v1952_v0 }
  0xa6   : > { %v1577_v41 = vtrunc.f32 %v2669_v34  ;;  %vm1569_vm9 = vcmp.eq.f32.partialorder %v2669_v34, 2139095040  ;;  %vm1574_vm3 = vcmp.ne.f32.partialorder %v2665_v18, %v1573_v43  ;;  %vm2702_vm13 = vmxor %vm1572_vm5, %vm1588_vm14  ;;  %vm1576_vm12 = vcmp.lt.f32.partialorder %v2669_v34, 1266679808  ;;  %v543_v43 = vld [vmem:[%s2997_s3 + $0x60] sm:$0xff] }
  0xa7   : > { %v2671_v39 = vmul.f32 0.0625, %v423_v11  ;;  %vm2687_vm7 = vmor %vm1574_vm3, %vm1569_vm9  ;;  %v1605_v59 = vxor.u32 2147483648, %v1604_v35 }
  0xa8   : > { %v1578_v44 = vcvt.f32.s32 %v1577_v41  ;;  %vm1581_vm8 = vmneg %vm2687_vm7 }
  0xa9   : > { %v2674_v40 = vand.u32 2147483647, %v2671_v39  ;;  %vm1599_vm1 = vmor %vm2695_vm11, %vm2702_vm13  ;;  %vm3026_vm2 = vcmp.eq.f32.partialorder %v2671_v39, 0  ;;  %vm1601_vm13 = vcmp.eq.f32.partialorder %v2660_v37, 3212836864 }
  0xaa   : > { %v1579_v47 = vand.u32 1, %v1578_v44  ;;  %vm1590_vm10 = vmand %vm1584_vm0, %vm2687_vm7  ;;  %v1600_v62 = vsel %vm1599_vm1, 2139095040, %v1952_v0  ;;  %vm1609_vm1 = vcmp.ne.f32.partialorder %v2660_v37, %v2660_v37 }
  0xab   : > { %1764 = vlog2.f32 %v2674_v40  ;;  %vm1640_vm3 = vcmp.gt.f32.partialorder %v2674_v40, 1065353216  ;;  %vm2735_vm11 = vmand %vm1572_vm5, %vm3026_vm2  ;;  %v1602_v5 = vsel %vm1601_vm13, 1065353216, %v1600_v62  ;;  %vm1586_vm2 = vcmp.eq.f32.partialorder %v2660_v37, 1065353216  ;;  %v546_v62 = vld [vmem:[%s2997_s3 + $0x78] sm:$0xff] }
  0xac   : > { %vm1580_vm4 = vcmp.eq.s32.totalorder %v1579_v47, 1  ;;  %vm1639_vm13 = vcmp.lt.s32.totalorder %v2671_v39, 0 }
  0xad   : > { %vm1582_vm15 = vmand %vm1580_vm4, %vm1581_vm8  ;;  %vm1587_vm4 = vcmp.lt.s32.totalorder %v2660_v37, 0 }
  0xae   : > { %v1763_v45 = vpop.eup %1762  ;;  %vm2723_vm14 = vmand %vm1576_vm12, %vm1582_vm15  ;;  %vm1636_vm15 = vcmp.lt.f32.partialorder %v2671_v39, 0  ;;  %vm1589_vm12 = vcmp.eq.f32.partialorder %v2663_v27, 2139095040 }
  0xaf   : > { %v1566_v46 = vmul.f32 %v1763_v45, %v2665_v18  ;;  %vm2745_vm8 = vmxor %vm1572_vm5, %vm1640_vm3  ;;  %v1606_v29 = vsel %vm2723_vm14, %v1605_v59, %v1604_v35  ;;  %vm1610_vm5 = vcmp.ne.f32.partialorder %v2665_v18, %v2665_v18  ;;  %vm1570_vm3 = vcmp.eq.f32.partialorder %v2665_v18, 0  ;;  %v537_v59 = vld [vmem:[%s2997_s3 + $0x30] sm:$0xff] }
  0xb0   : > { %v1607_v12 = vsel %vm1584_vm0, %v1606_v29, %v1604_v35  ;;  %vm1653_vm0 = vcmp.eq.f32.partialorder %v2671_v39, 3212836864  ;;  %v1659_v53 = vsel %vm1636_vm15, %v1606_v29, %v1604_v35  ;;  %v538_v29 = vld [vmem:[%s2997_s3 + $0x38] sm:$0xff] }
  0xb1   : > { %1766 = vpow2.f32 %v1566_v46  ;;  %v535_v46 = vld [vmem:[%s2997_s3 + $0x20] sm:$0xff] }
  0xb5   : > { %v1765_v49 = vpop.eup %1764 }
  0xb6   : > { %v1618_v54 = vmul.f32 %v1765_v49, %v2665_v18 }
  0xb8   : > { %1768 = vpow2.f32 %v1618_v54 }
  0xbb   : > { %v1767_v56 = vpop.eup %1766 }
  0xbc   : > { %v1591_v58 = vsel %vm1590_vm10, 2143289344, %v1767_v56  ;;  %vm1651_vm10 = vmor %vm2735_vm11, %vm2745_vm8  ;;  %vm3149_vm8 = vcmp.eq.f32.partialorder %v2671_v39, 0 }
  0xbd   : > { %v1593_v61 = vsel %vm1585_vm6, %v1592_v52, %v1591_v58  ;;  %vm1594_vm6 = vmand %vm1587_vm4, %vm2723_vm14  ;;  %v1652_v48 = vsel %vm1651_vm10, 2139095040, %v1952_v0 }
  0xbe   : > { %v1595_v2 = vxor.u32 2147483648, %v1593_v61  ;;  %vm1642_vm4 = vmand %vm1636_vm15, %vm2687_vm7  ;;  %vm1641_vm7 = vcmp.eq.f32.partialorder %v2674_v40, 2139095040  ;;  %v1654_v42 = vsel %vm1653_vm0, 1065353216, %v1652_v48  ;;  %vm594_vm15 = vcmask 517120  }
  0xbf   : > { %vm1611_vm11 = vmor %vm1609_vm1, %vm1610_vm5  ;;  %vm1661_vm1 = vcmp.ne.f32.partialorder %v2671_v39, %v2671_v39 }
  0xc0   : > { %v1596_v4 = vsel %vm1594_vm6, %v1595_v2, %v1593_v61  ;;  %vm1613_vm6 = vmor %vm1586_vm2, %vm1570_vm3  ;;  %vm1571_vm2 = vcmp.eq.f32.partialorder %v2665_v18, 1065353216  ;;  %v542_v18 = vld [vmem:[%s2997_s3 + $0x58] sm:$0xff] }
  0xc1   : > { %v1603_v8 = vsel %vm1569_vm9, %v1602_v5, %v1596_v4 }
  0xc2   : > { %v1769_v7 = vpop.eup %1768  ;;  %v1608_v9 = vsel %vm1589_vm12, %v1607_v12, %v1603_v8  ;;  %vm1646_vm12 = vmand %vm1639_vm13, %vm2723_vm14 }
  0xc3   : > { %v1643_v10 = vsel %vm1642_vm4, 2143289344, %v1769_v7  ;;  %v1612_v13 = vsel %vm1611_vm11, 2143289344, %v1608_v9  ;;  %vm1638_vm4 = vcmp.eq.f32.partialorder %v2671_v39, 1065353216  ;;  %vm1663_vm14 = vmor %vm1661_vm1, %vm1610_vm5  ;;  %vm458_vm11 = vcmask 1041409  }
  0xc4   : > { %v1645_v1 = vsel %vm3149_vm8, %v1592_v52, %v1643_v10  ;;  %v1614_v16 = vsel %vm1613_vm6, 1065353216, %v1612_v13  ;;  %vm1665_vm10 = vmor %vm1638_vm4, %vm1570_vm3  ;;  %vm3150_vm5 = vmmov 0   ;;  %vm795_vm3 = vcmask 1041408  }
  0xc5   : > { %v1647_v36 = vxor.u32 2147483648, %v1645_v1  ;;  %v1615_v17 = vsel %vm1571_vm2, %v2660_v37, %v1614_v16  ;;  %v533_v37 = vld [vmem:[%s2997_s3 + $0x10] sm:$0xff] }
  0xc7   : > { %v1648_v22 = vsel %vm1646_vm12, %v1647_v36, %v1645_v1 }
  0xc8   : > { %v1655_v0 = vsel %vm1569_vm9, %v1654_v42, %v1648_v22  ;;  %vm547_vm9 = vcmask 523264  }
  0xc9   : > { %v1660_v14 = vsel %vm1641_vm7, %v1659_v53, %v1655_v0  ;;  %v569_v28 = vsel %vm547_vm9, %v539_v15, 0.0  ;;  %v570_v30 = vsel %vm547_vm9, %v540_v24, 0.0  ;;  %v548_v32 = vsel %vm547_vm9, %v531_v25, 0.0 }
  0xca   : > { %v1664_v19 = vsel %vm1663_vm14, 2143289344, %v1660_v14  ;;  %v549_v33 = vsel %vm547_vm9, %v532_v26, 0.0  ;;  %v571_v38 = vadd.f32 %v570_v30, %v569_v28  ;;  %v572_v27 = vsel %vm547_vm9, %v541_v31, 0.0 }
  0xcb   : > { %v1666_v20 = vsel %vm1665_vm10, 1065353216, %v1664_v19  ;;  %v550_v11 = vadd.f32 %v549_v33, %v548_v32  ;;  %v551_v34 = vsel %vm547_vm9, %v533_v37, 0.0  ;;  %v574_v41 = vsel %vm547_vm9, %v542_v18, 0.0 }
  0xcc   : > { %v1667_v21 = vsel %vm1571_vm2, %v2671_v39, %v1666_v20  ;;  %v534_v39 = vld [vmem:[%s2997_s3 + $0x18] sm:$0xff]  ;;  %v573_v40 = vadd.f32 %v572_v27, %v571_v38  ;;  %v576_v49 = vsel %vm547_vm9, %v543_v43, 0.0  ;;  %v555_v54 = vsel %vm547_vm9, %v535_v46, 0.0  ;;  %v629_v38 = vld [vmem:[#allocation4 + $0x40] sm:$0xff]  ;;  %v630_v27 = vld [vmem:[#allocation4 + $0x48] sm:$0xff] }
  0xcd   : > { %v459_v23 = vsel %vm458_vm11, %v1667_v21, %v1615_v17  ;;  %v552_v44 = vadd.f32 %v551_v34, %v550_v11  ;;  %v553_v45 = vsel %vm547_vm9, %v534_v39, 0.0  ;;  %v578_v56 = vsel %vm547_vm9, %v544_v50, 0.0  ;;  %v1109_v17 = vld [vmem:[%s2999_s5] ss:$0 sm:$0xff]  ;;  %v631_v11 = vld [vmem:[#allocation4 + $0x50] sm:$0xff] }
  0xce   : > { %1207 = vmatmul.mubr.f32.vlgmr.msra.gmra.mrb[0].mxu0 %v459_v23  ;;  %v575_v47 = vadd.f32 %v574_v41, %v573_v40  ;;  %v557_v52 = vsel %vm547_vm9, %v536_v55, 0.0  ;;  %v580_v61 = vsel %vm547_vm9, %v545_v57, 0.0  ;;  %v559_v2 = vsel %vm547_vm9, %v537_v59, 0.0  ;;  %v632_v34 = vld [vmem:[#allocation4 + $0x58] sm:$0xff]  ;;  %v633_v40 = vld [vmem:[#allocation4 + $0x60] sm:$0xff]  ;;  %v634_v41 = vld [vmem:[#allocation4 + $0x68] sm:$0xff] }
  0xcf   : > { %v554_v51 = vadd.f32 %v553_v45, %v552_v44  ;;  %v582_v5 = vsel %vm547_vm9, %v546_v62, 0.0  ;;  %v561_v8 = vsel %vm547_vm9, %v538_v29, 0.0  ;;  %v1307_v18 = vpack.c.bf16 %v630_v27, %v629_v38  ;;  %v635_v44 = vld [vmem:[#allocation4 + $0x70] sm:$0xff]  ;;  %v636_v45 = vld [vmem:[#allocation4 + $0x78] sm:$0xff]  ;;  %v626_v29 = vld [vmem:[#allocation4 + $0x28] sm:$0xff] }
  0xd0   : > { %v577_v35 = vadd.f32 %v576_v49, %v575_v47  ;;  %v1310_v39 = vpack.c.bf16 %v632_v34, %v631_v11  ;;  %v1313_v43 = vpack.c.bf16 %v634_v41, %v633_v40  ;;  %v1316_v46 = vpack.c.bf16 %v636_v45, %v635_v44 }
  0xd1   : > { %v556_v58 = vadd.f32 %v555_v54, %v554_v51  ;;  %1308 = vmatpush3.bf16.msra.mxu1 %v1307_v18 }
  0xd2   : > { %v579_v60 = vadd.f32 %v578_v56, %v577_v35  ;;  %1309 = vmatprep.subr.bf16.mxu1 %v1948_v3  ;;  %v621_v35 = vld [vmem:[#allocation4] sm:$0xff]  ;;  %v622_v56 = vld [vmem:[#allocation4 + $0x8] sm:$0xff] }
  0xd3   : > { %v558_v63 = vadd.f32 %v557_v52, %v556_v58  ;;  %v1319_v59 = vpack.c.bf16 %v622_v56, %v621_v35 }
  0xd4   : > { %v581_v4 = vadd.f32 %v580_v61, %v579_v60  ;;  %v623_v60 = vld [vmem:[#allocation4 + $0x10] sm:$0xff]  ;;  %v624_v61 = vld [vmem:[#allocation4 + $0x18] sm:$0xff] }
  0xd5   : > { %v560_v7 = vadd.f32 %v559_v2, %v558_v63  ;;  %1311 = vmatpush3.bf16.msra.mxu1 %v1310_v39  ;;  %v1322_v63 = vpack.c.bf16 %v624_v61, %v623_v60  ;;  %v625_v2 = vld [vmem:[#allocation4 + $0x20] sm:$0xff] }
  0xd6   : > { %v583_v12 = vadd.f32 %v582_v5, %v581_v4  ;;  %1312 = vmatprep.subr.bf16.mxu1 %v1948_v3  ;;  %v1325_v4 = vpack.c.bf16 %v626_v29, %v625_v2  ;;  %v627_v5 = vld [vmem:[#allocation4 + $0x30] sm:$0xff] }
  0xd7   : > { %v562_v9 = vadd.f32 %v561_v8, %v560_v7  ;;  %v628_v7 = vld [vmem:[#allocation4 + $0x38] sm:$0xff] }
  0xd8   : > { %v584_v10 = vrot.slane %v583_v12, 4  ;;  %v1328_v8 = vpack.c.bf16 %v628_v7, %v627_v5 }
  0xd9   : > { %v563_v13 = vrot.slane %v562_v9, 4  ;;  %1314 = vmatpush3.bf16.msra.mxu1 %v1313_v43 }
  0xda   : > { %v585_v1 = vadd.f32 %v584_v10, %v583_v12  ;;  %1315 = vmatprep.subr.bf16.mxu1 %v1948_v3  ;;  %v1112_v10 = vld [vmem:[%s3001_s7] ss:$0 sm:$0xff] }
  0xdb   : > { %v564_v48 = vadd.f32 %v563_v13, %v562_v9 }
  0xdc   : > { %v586_v36 = vrot.slane %v585_v1, 2 }
  0xdd   : > { %v565_v16 = vrot.slane %v564_v48, 2  ;;  %1317 = vmatpush3.bf16.msra.mxu1 %v1316_v46 }
  0xde   : > { %v587_v22 = vadd.f32 %v586_v36, %v585_v1  ;;  %1318 = vmatprep.subr.bf16.mxu1 %v1948_v3 }
  0xdf   : > { %v566_v42 = vadd.f32 %v565_v16, %v564_v48 }
  0xe0   : > { %v588_v0 = vrot.slane %v587_v22, 1 }
  0xe1   : > { %v567_v53 = vrot.slane %v566_v42, 1 }
  0xe2   : > { %v589_v14 = vadd.f32 %v588_v0, %v587_v22 }
  0xe3   : > { %v568_v19 = vadd.f32 %v567_v53, %v566_v42 }
  0xe4   : > { %v592_v15 = vmul.f32 0.015625, %v589_v14 }
  0xe5   : > { %v591_v25 = vmul.f32 0.015625, %v568_v19 }
 0x1a1   : > { %v527_v20 = vpop.f32.mrb[0].mxu0 }
 0x1a2   : > { %v2869_v21 = vadd.f32 %v1109_v17, %v527_v20  ;;  %v1208_v23 = vpop.f32.mrb[1].mxu0 }
 0x1a4   : > { %v593_v24 = vmul.f32 %v2869_v21, %v2869_v21  ;;  %v600_v26 = vrot.slane %v2869_v21, 1  ;;  %v603_v31 = vmul.f32 %v591_v25, %v2869_v21 }
 0x1a6   : > { %v595_v28 = vsel %vm594_vm15, %v593_v24, 0.0  ;;  %v604_v30 = vmul.f32 %v600_v26, %v592_v15 }
 0x1a7   : > { %596 = vadd.xlane.f32.xlu0 %v595_v28 }
 0x1a8   : > { %v607_v32 = vrot.slane %v604_v30, 7 }
 0x1aa   : > { %v608_v33 = vsel %vm458_vm11, %v607_v32, %v603_v31 }
 0x1ab   : > { %v610_v37 = vsel %vm594_vm15, %v608_v33, 0.0 }
 0x1ac   : > { %611 = vadd.xlane.f32.xlu0 %v610_v37 }
 0x234   : > { %v597_v47 = vpop.xlane.xlu0 %596 }
 0x235   : > { %1770 = vrcp.f32 %v597_v47 }
 0x239   : > { %v612_v50 = vpop.xlane.xlu0 %611 }
 0x23f   : > { %v1771_v49 = vpop.eup %1770 }
 0x240   : > { %v613_v51 = vmul.f32 %v1771_v49, %v612_v50 }
 0x242   : > { %v614_v54 = vmul.f32 %v613_v51, %v2869_v21 }
 0x244   : > { %v616_v55 = vrot.slane %v614_v54, 1  ;;  %v619_v58 = vsub.f32 %v591_v25, %v614_v54 }
 0x246   : > { %v620_v57 = vsub.f32 %v592_v15, %v616_v55 }
 0x248   : > { %v639_v52 = vrot.slane %v620_v57, 7 }
 0x24a   : > { %v640_v62 = vsel %vm458_vm11, %v639_v52, %v619_v58 }
 0x24b   : > { %1226 = vmatmul.mubr.msk.f32.vlgmr.msra.gmra.mrb[0].mxu1 %vm547_vm9, %v640_v62 }
 0x24c   : > { %1320 = vmatpush3.bf16.msra.mxu1 %v1319_v59  ;;  %1244 = vmatprep.mubr.msk.f32.mxu1 %vm3150_vm5, %v1950_v6 }
 0x24d   : > { %1321 = vmatprep.subr.bf16.mxu1 %v1948_v3 }
 0x250   : > { %1323 = vmatpush3.bf16.msra.mxu1 %v1322_v63 }
 0x251   : > { %1324 = vmatprep.subr.bf16.mxu1 %v1948_v3 }
 0x254   : > { %1326 = vmatpush3.bf16.msra.mxu1 %v1325_v4 }
 0x255   : > { %1327 = vmatprep.subr.bf16.mxu1 %v1948_v3 }
 0x258   : > { %1329 = vmatpush3.bf16.msra.mxu1 %v1328_v8 }
 0x25b   : > { %1245 = vmatmul.mubr.msk.f32.vlgmr.msra.gmra.mrb[2].mxu1 %vm547_vm9, %v2869_v21 }
 0x31e   : > { %v709_v12 = vpop.f32.mrb[0].mxu1 }
 0x31f   : > { %v1227_v6 = vpop.f32.mrb[1].mxu1 }
 0x32e   : > { %v781_v9 = vpop.f32.mrb[2].mxu1 }
 0x32f   : > { %v782_v13 = vadd.f32 %v781_v9, %v709_v12  ;;  %v1246_v1 = vpop.f32.mrb[3].mxu1 }
 0x331   : > { %v792_v48 = vadd.f32 %v1112_v10, %v782_v13 }
 0x333   : > { %793 = vst [vmem:[#allocation9] sm:$0x3] %v792_v48  ;;  %v794_v36 = vmul.f32 %v792_v48, %v792_v48 }
 0x335   : > { %v796_v16 = vsel %vm795_vm3, %v794_v36, 0.0 }
 0x336   : > { %797 = vadd.xlane.f32.xlu1 %v796_v16 }
 0x3c3   : > { %v798_v3 = vpop.xlane.xlu1 %797 }
 0x3c4   : > { %1772 = vrsqrt.f32 %v798_v3  ;;  %vm801_vm13 = vcmp.eq.f32.partialorder %v798_v3, inf  ;;  %v804_v0 = vand.u32 2147483648, %v798_v3  ;;  %vm803_vm8 = vcmp.eq.f32.partialorder %v798_v3, 0.0 }
 0x3ce   : > { %v1773_v22 = vpop.eup %1772 }
 0x3cf   : > { %v800_v42 = vmul.f32 %v1773_v22, %v798_v3 }
 0x3d1   : > { %v802_v53 = vsel %vm801_vm13, %v798_v3, %v800_v42 }
 0x3d2   : > { %v805_v14 = vsel %vm803_vm8, %v804_v0, %v802_v53 }
 0x3d3   : > { %v806_v17 = vmax.f32 %v805_v14, 1e-12 }
 0x3d5   : > { %1774 = vrcp.f32 %v806_v17 }
 0x3df   : > { %v1775_v19 = vpop.eup %1774 }
 0x3e0   : > { %v808_v20 = vmul.f32 %v1775_v19, %v792_v48 }
 0x3e2   : > { %809 = vst [vmem:[#allocation2] sm:$0x3] %v808_v20 }
 0x3e3 PF: > { %v810_v21 = vld [vmem:[%s2170_s12] sm:$0xff]  ;;  %v811_v23 = vld [vmem:[%s2170_s12 + $0x8] sm:$0xff]  ;;  %v812_v15 = vld [vmem:[%s2170_s12 + $0x10] sm:$0xff]  ;;  %v1953_v24 = vmov 0.0|0.0   ;;  %vm1954_vm0 = vmmov 0   ;;  %v1955_v32 = vmov 0.0  }
 0x3e4   : > { %1330 = vmatprep.subr.bf16.mxu0 %v1953_v24  ;;  %v826_v25 = vmul.f32 %v810_v21, %v810_v21  ;;  %v827_v26 = vmul.f32 %v811_v23, %v811_v23  ;;  %v1331_v28 = vpack.c.bf16 %v811_v23, %v810_v21  ;;  %v813_v30 = vld [vmem:[%s2170_s12 + $0x18] sm:$0xff]  ;;  %v828_v31 = vmul.f32 %v812_v15, %v812_v15  ;;  %v814_v27 = vld [vmem:[%s2170_s12 + $0x20] sm:$0xff]  ;;  %v815_v18 = vld [vmem:[%s2170_s12 + $0x28] sm:$0xff]  ;;  %s1957_s17 = smov [#allocation9]   ;;  %p3151_p10 = scmp.eq.s32.totalorder %s2038_s0, 3 }
 0x3e5   : > { %1279 = vmatprep.mubr.msk.f32.mxu0 %vm1954_vm0, %v1955_v32  ;;  %v829_v37 = vmul.f32 %v813_v30, %v813_v30  ;;  %v1334_v38 = vpack.c.bf16 %v813_v30, %v812_v15  ;;  %v830_v34 = vmul.f32 %v814_v27, %v814_v27  ;;  %v960_v39 = vld [vmem:[%s2995_s1] sm:$0x3]  ;;  %v831_v41 = vmul.f32 %v815_v18, %v815_v18  ;;  %v816_v44 = vld [vmem:[%s2170_s12 + $0x30] sm:$0xff]  ;;  %v818_v55 = vld [vmem:[%s2170_s12 + $0x40] sm:$0xff]  ;;  %s990_s20 = sshll.u32 %s1957_s17, 4  ;;  %s991_s20 = int_to_ptr.vmem [resolvable:$true] %s990_s20 }
 0x3e6   : > { %v842_v33 = vadd.f32 %v827_v26, %v826_v25  ;;  %1332 = vmatpush3.bf16.msra.mxu0 %v1331_v28  ;;  %v1337_v43 = vpack.c.bf16 %v815_v18, %v814_v27  ;;  %v817_v45 = vld [vmem:[%s2170_s12 + $0x38] sm:$0xff]  ;;  %v1956_v46 = vmov 0   ;;  %v832_v49 = vmul.f32 %v816_v44, %v816_v44  ;;  %v819_v35 = vld [vmem:[%s2170_s12 + $0x48] sm:$0xff]  ;;  %v820_v60 = vld [vmem:[%s2170_s12 + $0x50] sm:$0xff]  ;;  %s1841_s29 = scalar_lea.vmem %s991_s20, 32  ;;  %p1848_p7 = scmp.lt.s32.totalorder %s991_s20, %s991_s20 }
 0x3e7   : > { %1333 = vmatprep.subr.bf16.mxu0 %v1953_v24  ;;  %1776 = vset.pattern.permute.xlu0 %v1956_v46  ;;  %v833_v51 = vmul.f32 %v817_v45, %v817_v45  ;;  %v1340_v54 = vpack.c.bf16 %v817_v45, %v816_v44  ;;  %v834_v57 = vmul.f32 %v818_v55, %v818_v55  ;;  %v821_v61 = vld [vmem:[%s2170_s12 + $0x58] sm:$0xff]  ;;  %v822_v5 = vld [vmem:[%s2170_s12 + $0x60] sm:$0xff]  ;;  %v823_v7 = vld [vmem:[%s2170_s12 + $0x68] sm:$0xff]  ;;  %p1842_p9 = scmp.ne.s32.totalorder %s991_s20, %s1841_s29  ;;  %p1849_p5 = scmp.lt.s32.totalorder %s1841_s29, %s1841_s29 }
 0x3e8   : > { %v843_v11 = vadd.f32 %v842_v33, %v828_v31  ;;  %967 = vperm.xlu0 %1776, %v960_v39   ;;  %v835_v52 = vmul.f32 %v819_v35, %v819_v35  ;;  %v1343_v59 = vpack.c.bf16 %v819_v35, %v818_v55  ;;  %v836_v63 = vmul.f32 %v820_v60, %v820_v60  ;;  %v824_v13 = vld [vmem:[%s2170_s12 + $0x70] sm:$0xff]  ;;  %v825_v1 = vld [vmem:[%s2170_s12 + $0x78] sm:$0xff] }
 0x3e9   : > { %v837_v29 = vmul.f32 %v821_v61, %v821_v61  ;;  %v1346_v4 = vpack.c.bf16 %v821_v61, %v820_v60  ;;  %v838_v12 = vmul.f32 %v822_v5, %v822_v5  ;;  %v839_v9 = vmul.f32 %v823_v7, %v823_v7  ;;  %v872_v53 = vld [vmem:[#allocation2] sm:$0x3]  ;;  %p1843_p2 = pnand %p1842_p9, %p3151_p10  ;;  %p1850_p11 = por %p1849_p5, %p1848_p7 }
 0x3ea   : > { %v844_v40 = vadd.f32 %v843_v11, %v829_v37  ;;  %1335 = vmatpush3.bf16.msra.mxu0 %v1334_v38  ;;  %v1349_v10 = vpack.c.bf16 %v823_v7, %v822_v5  ;;  %v840_v36 = vmul.f32 %v824_v13, %v824_v13  ;;  %v841_v3 = vmul.f32 %v825_v1, %v825_v1 }
 0x3eb   : > { %1336 = vmatprep.subr.bf16.mxu0 %v1953_v24  ;;  %v1352_v22 = vpack.c.bf16 %v825_v1, %v824_v13  ;;  %p1844_p4 = pneg %p1843_p2 }
 0x3ec   : > { %v845_v47 = vadd.f32 %v844_v40, %v830_v34 }
 0x3ed   : > { %p1851_p13 = pnand %p1850_p11, %p1844_p4 }
 0x3ee   : > { %v846_v50 = vadd.f32 %v845_v47, %v831_v41  ;;  %1338 = vmatpush3.bf16.msra.mxu0 %v1337_v43 }
 0x3ef   : > { %1339 = vmatprep.subr.bf16.mxu0 %v1953_v24 }
 0x3f0   : > { %v847_v56 = vadd.f32 %v846_v50, %v832_v49 }
 0x3f2   : > { %v848_v58 = vadd.f32 %v847_v56, %v833_v51  ;;  %1341 = vmatpush3.bf16.msra.mxu0 %v1340_v54 }
 0x3f3   : > { %1342 = vmatprep.subr.bf16.mxu0 %v1953_v24 }
 0x3f4   : > { %v849_v62 = vadd.f32 %v848_v58, %v834_v57 }
 0x3f6   : > { %v850_v2 = vadd.f32 %v849_v62, %v835_v52  ;;  %1344 = vmatpush3.bf16.msra.mxu0 %v1343_v59 }
 0x3f7   : > { %1345 = vmatprep.subr.bf16.mxu0 %v1953_v24 }
 0x3f8   : > { %v851_v8 = vadd.f32 %v850_v2, %v836_v63 }
 0x3fa   : > { %v852_v6 = vadd.f32 %v851_v8, %v837_v29  ;;  %1347 = vmatpush3.bf16.msra.mxu0 %v1346_v4 }
 0x3fb   : > { %1348 = vmatprep.subr.bf16.mxu0 %v1953_v24 }
 0x3fc   : > { %v853_v48 = vadd.f32 %v852_v6, %v838_v12 }
 0x3fe   : > { %v854_v16 = vadd.f32 %v853_v48, %v839_v9  ;;  %1350 = vmatpush3.bf16.msra.mxu0 %v1349_v10 }
 0x3ff   : > { %1351 = vmatprep.subr.bf16.mxu0 %v1953_v24 }
 0x400   : > { %v855_v42 = vadd.f32 %v854_v16, %v840_v36 }
 0x402   : > { %v856_v0 = vadd.f32 %v855_v42, %v841_v3  ;;  %1353 = vmatpush3.bf16.msra.mxu0 %v1352_v22 }
 0x405   : > { %1280 = vmatmul.mubr.f32.vlgmr.msra.gmra.mrb[0].mxu0 %v872_v53 }
 0x406   : > { %1854 = shalt.err (!%p1851_p13)
}
 0x407   : > { %s1855_s23 = scalar_lea.hbm %s3003_s9, 32  ;;  %p3152_p6 = pmov %p3151_p10 }
 0x408   : > { %p1856_p0 = scmp.ne.s32.totalorder %s3003_s9, %s1855_s23  ;;  %p1861_p1 = scmp.lt.u32.totalorder %s1855_s23, %s3003_s9 }
 0x40a   : > { %p1857_p12 = pnand %p1856_p0, %p3152_p6 }
 0x40c   : > { %p1858_p3 = pneg %p1857_p12 }
 0x40e   : > { %p1863_p8 = pnand %p1861_p1, %p1858_p3 }
 0x410   : > { %1866 = shalt.err (!%p1863_p8)
}
 0x411   : > { %p3153_p9 = pmov %p3152_p6  ;;  %v857_v14 = vrot.slane %v856_v0, 4  ;;  %v961_v11 = vlaneseq  ;;  %s1114_s24 = sshll.u32 %s2038_s0, 7 }
 0x412   : > { %v964_v40 = vstv %s1114_s24  ;;  %s1118_s17 = sshll.u32 %s2038_s0, 5  ;;  %s979_s23 = scalar_lea.sflag [#allocation11], %s2166_s22 }
 0x413   : > { %1675 = dma.vmem_to_hbm [thread:$0]  (%p3153_p9), %s991_s20, 32, %s3003_s9, [#allocation6]   ;;  %v858_v17 = vadd.f32 %v857_v14, %v856_v0  ;;  %v962_v39 = vand.u32 127, %v961_v11 }
 0x414   : > { %s1003_s20 = sshll.u32 %s2177_s11, 4  ;;  %s2946_s28 = scalar_lea.hbm %s3004_s10, %s1118_s17  ;;  %s2948_s20 = int_to_ptr.vmem [resolvable:$true] %s1003_s20 }
 0x415   : > { %v859_v19 = vrot.slane %v858_v17, 2  ;;  %v965_v41 = vadd.s32 %v964_v40, %v962_v39  ;;  %s1867_s21 = scalar_lea.vmem %s2948_s20, 32  ;;  %p3154_p2 = scmp.ne.s32.totalorder %s3032_s26, 0 }
 0x416   : > { %p1868_p10 = scmp.ne.s32.totalorder %s2948_s20, %s1867_s21  ;;  %s1958_s30 = smov [#allocation10]  }
 0x417   : > { %v860_v20 = vadd.f32 %v859_v19, %v858_v17  ;;  %s1871_s13 = sshll.u32 %s1958_s30, 4  ;;  %s1872_s13 = int_to_ptr.vmem [resolvable:$false] %s1871_s13 }
 0x418   : > { %p1869_p4 = pnand %p1868_p10, %p3154_p2  ;;  %s1873_s14 = scalar_lea.vmem %s1872_s13, 64 }
 0x419   : > { %v861_v21 = vrot.slane %v860_v20, 1  ;;  %p1874_p5 = scmp.lt.s32.totalorder %s2948_s20, %s1872_s13  ;;  %p1875_p11 = scmp.lt.s32.totalorder %s1873_s14, %s1867_s21 }
 0x41a   : > { %p1870_p7 = pneg %p1869_p4 }
 0x41b   : > { %v862_v23 = vadd.f32 %v861_v21, %v860_v20  ;;  %p1876_p13 = por %p1875_p11, %p1874_p5 }
 0x41d   : > { %1777 = vrsqrt.f32 %v862_v23  ;;  %vm865_vm6 = vcmp.eq.f32.partialorder %v862_v23, inf  ;;  %v868_v25 = vand.u32 2147483648, %v862_v23  ;;  %vm867_vm7 = vcmp.eq.f32.partialorder %v862_v23, 0.0  ;;  %p1877_p0 = pnand %p1876_p13, %p1870_p7 }
 0x427   : > { %v1778_v15 = vpop.eup %1777 }
 0x428   : > { %v864_v24 = vmul.f32 %v1778_v15, %v862_v23 }
 0x42a   : > { %v866_v26 = vsel %vm865_vm6, %v862_v23, %v864_v24 }
 0x42b   : > { %v869_v28 = vsel %vm867_vm7, %v868_v25, %v866_v26 }
 0x42c   : > { %v870_v30 = vmax.f32 %v869_v28, 1e-12 }
 0x42e   : > { %1779 = vrcp.f32 %v870_v30 }
 0x438   : > { %v1780_v31 = vpop.eup %1779 }
 0x467   : > { %v968_v43 = vpop.permute.xlu0 %967 }
 0x468   : > { %vm969_vm12 = vcmp.eq.s32.totalorder %v965_v41, %v968_v43 }
 0x469   : > { %v1115_v47 = vsel %vm969_vm12, 1.0, %v1955_v32 }
 0x46a   : > { %v973_v55 = vsub.f32 1.0, %v1115_v47 }
 0x4d8   : > { %v939_v33 = vpop.f32.mrb[0].mxu0 }
 0x4d9   : > { %v943_v37 = vmul.f32 %v1780_v31, %v939_v33  ;;  %v1281_v38 = vpop.f32.mrb[1].mxu0 }
 0x4db   : > { %v944_v27 = vmul.f32 %v943_v37, %v943_v37  ;;  %v954_v51 = vmul.f32 0.9887711, %v943_v37  ;;  %v1113_v56 = vadd.f32 -0.02241572, %v943_v37  ;;  %vm957_vm2 = vcmp.gt.f32.partialorder %v943_v37, -0.9887711 }
 0x4dc   : > { %v974_v52 = vmul.f32 %v973_v55, %v943_v37 }
 0x4dd   : > { %v945_v18 = vsub.f32 1.0, %v944_v27 }
 0x4df   : > { %v946_v34 = vmax.f32 %v945_v18, 0.0 }
 0x4e1   : > { %1781 = vrsqrt.f32 %v946_v34  ;;  %vm949_vm1 = vcmp.eq.f32.partialorder %v946_v34, inf  ;;  %v952_v46 = vand.u32 2147483648, %v946_v34  ;;  %vm951_vm4 = vcmp.eq.f32.partialorder %v946_v34, 0.0 }
 0x4eb   : > { %v1782_v44 = vpop.eup %1781 }
 0x4ec   : > { %v948_v45 = vmul.f32 %v1782_v44, %v946_v34 }
 0x4ee   : > { %v950_v49 = vsel %vm949_vm1, %v946_v34, %v948_v45 }
 0x4ef   : > { %v953_v50 = vsel %vm951_vm4, %v952_v46, %v950_v49 }
 0x4f0   : > { %v955_v54 = vmul.f32 0.14943813, %v953_v50 }
 0x4f2   : > { %v956_v35 = vsub.f32 %v954_v51, %v955_v54 }
 0x4f4   : > { %v959_v57 = vsel %vm957_vm2, %v956_v35, %v1113_v56 }
 0x4f5   : > { %v972_v58 = vmul.f32 %v1115_v47, %v959_v57 }
 0x4f7   : > { %v975_v59 = vadd.f32 %v974_v52, %v972_v58 }
 0x4f9   : > { %v976_v60 = vmul.f32 30.0, %v975_v59 }
 0x4fb   : > { %977 = vst [vmem:[%s2177_s11] sm:$0x3] %v976_v60 }
 0x4fc   : > { %1880 = shalt.err (!%p1877_p0)
}
 0x4fd   : > { %s1881_s22 = scalar_lea.hbm %s2946_s28, 32  ;;  %s1885_s25 = scalar_lea.hbm %s3004_s10, 128 }
 0x4fe   : > { %p1882_p6 = scmp.ne.s32.totalorder %s2946_s28, %s1881_s22  ;;  %p1886_p1 = scmp.lt.u32.totalorder %s2946_s28, %s3004_s10 }
 0x4ff   : > { %p1887_p8 = scmp.lt.u32.totalorder %s1885_s25, %s1881_s22  ;;  %p1889_p10 = scmp.lt.u32.totalorder %s1881_s22, %s2946_s28 }
 0x500   : > { %p1883_p12 = pnand %p1882_p6, %p3154_p2 }
 0x501   : > { %p1888_p9 = por %p1887_p8, %p1886_p1 }
 0x502   : > { %p1884_p3 = pneg %p1883_p12 }
 0x503   : > { %p1890_p4 = por %p1889_p10, %p1888_p9 }
 0x505   : > { %p1891_p7 = pnand %p1890_p4, %p1884_p3 }
 0x507   : > { %1894 = shalt.err (!%p1891_p7)
}
 0x508   : > { %1676 = dma.vmem_to_hbm [thread:$0]  (%p3154_p2), %s2948_s20, 32, %s2946_s28, %s979_s23  }
 0x509   : > { %p3155_p5 = scmp.eq.s32.totalorder %s2038_s0, 3 }
 0x50b   : > { %1920 = dma.done.wait (%p3155_p5), [#allocation6], 32   ;;  %p3156_p11 = pmov %p3155_p5 }
 0x50d   : > { %1922 = vsyncadd (%p3156_p11), [#allocation6], 4294967264 }
 0x50e PF: > { %p1697_p13 = scmp.ge.s32.totalorder %s1941_s18, 2  ;;  %s1019_s29 = sand.u32 1, %s1929_s15  }
 0x50f   : > { %p3157_p0 = scmp.ne.s32.totalorder %s3033_s27, 0  ;;  %s1020_s12 = scalar_lea.sflag [#allocation11], %s1019_s29 }
 0x511   : > { %p1689_p6 = pnand %p1697_p13, %p3157_p0 }
 0x513   : > { %1924 = dma.done.wait (!%p1689_p6), %s1020_s12, 32  }
 0x514   : > { %1926 = vsyncadd (!%p1689_p6), %s1020_s12, 4294967264  ;;  %s3158_s18 = sld [smem:[#allocation17_spill]]  ;;  %s3159_s26 = sld [smem:[#allocation16_spill]] }
 0x515   : > { %s3160_s17 = sld [smem:[#allocation18_spill]]  ;;  %s3161_s15 = smov %s1933_s16 }
 0x51a   : > { %p27_p2 = scmp.ge.s32.totalorder %s3158_s18, 6   ;;  %s3162_s16 = smov %s3159_s26 }
 0x51c   :  { %29 = sbr.rel (!%p27_p2) target bundleno = 9 (0x9), region = 119 }
 0x523   :  { %1025 = vsyncpa [#allocation5], 1 }
 0x524   :  { %1027 = vsyncpa [#allocation5 + $0x1], 1 }
 0x525   :  { %1028 = vsyncpa [#allocation8], 1 }
 0x526   :  { %1030 = vsyncpa [#allocation8 + $0x1], 1 }
 0x527   :  { %1031 = vsyncpa [#allocation6], 1 }
 0x528   :  { %1033 = vsyncpa [#allocation6 + $0x1], 1 }
 0x529   :  { %1034 = vsyncpa [#allocation11], 1 }
 0x52a   :  { %1036 = vsyncpa [#allocation11 + $0x1], 1 }

</bundles_post_ra>
